<compile_context>
chip_gen: v6e
topology: v6e:2x2x1
jax: 0.10.0
libtpu: 0.0.40
codegen_flags: <defaults>
</compile_context>

<pallas_src>
import math

import jax
import jax.numpy as jnp
from jax.experimental import pallas as pl
from jax.experimental.pallas import tpu as pltpu


# --------------------------------------------------------------------------
# Fused kernel: n_layers-deep GRU (PyTorch gate order [r | z | n]) + final FC.
# --------------------------------------------------------------------------
def make_fused_kernel(T, B_pad, H, n_layers):
    """Ref layout:
       inputs : gi0 (T, B_pad, 3H)           -- folded layer-0 input projection
                whh0_t (H, 3H), bhh0 (1, 3H)
                per layer l>=1: wih_t (H, 3H), bih (1, 3H), whh_t (H, 3H), bhh (1, 3H)
                fc_w_t (H, O), fc_b (1, O)
       output : logits (B_pad, O)
       scratch: y (T*B_pad, H)  -- previous layer's output sequence (VMEM resident)
    """

    def kernel(*refs):
        gi0_ref, whh0_ref, bhh0_ref = refs[0], refs[1], refs[2]
        extra = refs[3:-4]                       # 4 refs per layer >= 1
        fcw_ref, fcb_ref, out_ref, y_ref = refs[-4], refs[-3], refs[-2], refs[-1]

        def gru_scan(get_gi, whh, bhh, store_y):
            # Only gh = h @ W_hh^T + gate math sits on the sequential critical path.
            h = jnp.zeros((B_pad, H), jnp.float32)
            for t in range(T):                   # T static -> fully unrolled
                gi = get_gi(t)                   # (B_pad, 3H), precomputed
                gh = jnp.dot(h, whh, preferred_element_type=jnp.float32) + bhh
                r = jax.nn.sigmoid(gi[:, 0 * H:1 * H] + gh[:, 0 * H:1 * H])
                z = jax.nn.sigmoid(gi[:, 1 * H:2 * H] + gh[:, 1 * H:2 * H])
                n = jnp.tanh(gi[:, 2 * H:3 * H] + r * gh[:, 2 * H:3 * H])
                h = n + z * (h - n)              # == (1-z)*n + z*h, one fewer mul
                if store_y:                      # feed next layer via VMEM scratch
                    y_ref[pl.ds(t * B_pad, B_pad), :] = h
            return h

        # ---- layer 0: gi comes straight from the folded-embedding gather ----
        h = gru_scan(lambda t: gi0_ref[t], whh0_ref[...], bhh0_ref[...],
                     store_y=(n_layers > 1))

        # ---- layers 1..L-1: hoist the input projection into one big MXU matmul ----
        for l in range(n_layers - 1):
            wih = extra[4 * l][...]
            bih = extra[4 * l + 1][...]
            whh = extra[4 * l + 2][...]
            bhh = extra[4 * l + 3][...]
            gi_all = jnp.dot(y_ref[...], wih,
                             preferred_element_type=jnp.float32) + bih   # (T*B_pad, 3H)
            h = gru_scan(lambda t, g=gi_all: g[t * B_pad:(t + 1) * B_pad, :],
                         whh, bhh, store_y=(l < n_layers - 2))

        # ---- final FC on the last layer's final hidden state ----
        out_ref[...] = (jnp.dot(h, fcw_ref[...],
                                preferred_element_type=jnp.float32) + fcb_ref[...])

    return kernel


# --------------------------------------------------------------------------
# Parameter init (deterministic, mimics PyTorch shapes / default init ranges)
# --------------------------------------------------------------------------
def init_params(key, vocab_size, embedding_dim, hidden_dim, output_dim, n_layers):
    keys = jax.random.split(key, 2 + 4 * n_layers + 2)
    ki = iter(keys)

    emb = jax.random.normal(next(ki), (vocab_size, embedding_dim), jnp.float32)
    emb = emb.at[0].set(0.0)                       # padding_idx=0

    bound = 1.0 / math.sqrt(hidden_dim)
    gru_layers = []
    for layer in range(n_layers):
        in_dim = embedding_dim if layer == 0 else hidden_dim
        w_ih = jax.random.uniform(next(ki), (3 * hidden_dim, in_dim),
                                  jnp.float32, -bound, bound)
        w_hh = jax.random.uniform(next(ki), (3 * hidden_dim, hidden_dim),
                                  jnp.float32, -bound, bound)
        b_ih = jax.random.uniform(next(ki), (3 * hidden_dim,),
                                  jnp.float32, -bound, bound)
        b_hh = jax.random.uniform(next(ki), (3 * hidden_dim,),
                                  jnp.float32, -bound, bound)
        gru_layers.append(dict(wih_t=w_ih.T, whh_t=w_hh.T, bih=b_ih, bhh=b_hh))

    fcb = 1.0 / math.sqrt(hidden_dim)
    fc_w = jax.random.uniform(next(ki), (output_dim, hidden_dim),
                              jnp.float32, -fcb, fcb)
    fc_b = jax.random.uniform(next(ki), (output_dim,), jnp.float32, -fcb, fcb)

    params = dict(embedding=emb, gru=gru_layers, fc_w_t=fc_w.T, fc_b=fc_b)
    # Fold the layer-0 input projection into the embedding table (offline, once):
    # gi0 for a token id v is simply proj_emb[v].
    params["proj_emb"] = emb @ gru_layers[0]["wih_t"] + gru_layers[0]["bih"]
    return params


# --------------------------------------------------------------------------
# Full forward pass (eval mode: dropout = identity). One pallas_call total.
# --------------------------------------------------------------------------
@jax.jit
def forward(text, params):
    B, T = text.shape
    H = params["gru"][0]["whh_t"].shape[0]
    O = params["fc_w_t"].shape[1]
    L = len(params["gru"])
    B_pad = max(8, ((B + 7) // 8) * 8)             # pad batch to f32 sublane count

    # Time-major gather of the folded layer-0 projection: (T, B_pad, 3H).
    # (No HBM transpose of activations; padded rows use token 0 = padding_idx.)
    text_pad = jnp.pad(text, ((0, B_pad - B), (0, 0)))
    gi0 = params["proj_emb"][text_pad.T]

    args = [gi0,
            params["gru"][0]["whh_t"], params["gru"][0]["bhh"].reshape(1, -1)]
    for layer in params["gru"][1:]:
        args += [layer["wih_t"], layer["bih"].reshape(1, -1),
                 layer["whh_t"], layer["bhh"].reshape(1, -1)]
    args += [params["fc_w_t"], params["fc_b"].reshape(1, -1)]

    out = pl.pallas_call(
        make_fused_kernel(T, B_pad, H, L),
        out_shape=jax.ShapeDtypeStruct((B_pad, O), jnp.float32),
        scratch_shapes=[pltpu.VMEM((T * B_pad, H), jnp.float32)],
    )(*args)
    return out[:B]


# --------------------------------------------------------------------------
# Pure-JAX reference (same math, unfolded) for a sanity check.
# --------------------------------------------------------------------------
def forward_ref(text, params):
    emb = params["embedding"][text]
    x = jnp.transpose(emb, (1, 0, 2))            # (T, B, E)
    T, B, _ = x.shape
    h_fin = None
    for layer in params["gru"]:
        H = layer["whh_t"].shape[0]
        h = jnp.zeros((B, H), jnp.float32)
        outs = []
        for t in range(T):
            gi = x[t] @ layer["wih_t"] + layer["bih"]
            gh = h @ layer["whh_t"] + layer["bhh"]
            r = jax.nn.sigmoid(gi[:, :H] + gh[:, :H])
            z = jax.nn.sigmoid(gi[:, H:2 * H] + gh[:, H:2 * H])
            n = jnp.tanh(gi[:, 2 * H:] + r * gh[:, 2 * H:])
            h = (1.0 - z) * n + z * h
            outs.append(h)
        x = jnp.stack(outs, axis=0)
        h_fin = h
    return h_fin @ params["fc_w_t"] + params["fc_b"]


if __name__ == "__main__":
    # Small, forward-consistent shapes.
    VOCAB, EMB, HID, OUT, LAYERS = 50, 32, 32, 3, 2
    B, T = 2, 8

    key = jax.random.PRNGKey(0)
    k_param, k_text = jax.random.split(key)
    params = init_params(k_param, VOCAB, EMB, HID, OUT, LAYERS)
    text = jax.random.randint(k_text, (B, T), 0, VOCAB, dtype=jnp.int32)

    logits = forward(text, params)
    logits = jax.block_until_ready(logits)

    ref = forward_ref(text, params)
    assert logits.shape == (B, OUT)
    assert jnp.allclose(logits, ref, rtol=1e-2, atol=1e-2), (logits, ref)

    print("KERNEL_OK")
</pallas_src>

<mosaic_0001>
module attributes {stable_mosaic.version = 11 : i64} {
  func.func @kernel(%arg0: memref<8x8x96xf32, #tpu.memory_space<vmem>>, %arg1: memref<32x96xf32, #tpu.memory_space<vmem>>, %arg2: memref<1x96xf32, #tpu.memory_space<vmem>>, %arg3: memref<32x96xf32, #tpu.memory_space<vmem>>, %arg4: memref<1x96xf32, #tpu.memory_space<vmem>>, %arg5: memref<32x96xf32, #tpu.memory_space<vmem>>, %arg6: memref<1x96xf32, #tpu.memory_space<vmem>>, %arg7: memref<32x3xf32, #tpu.memory_space<vmem>>, %arg8: memref<1x3xf32, #tpu.memory_space<vmem>>, %arg9: memref<8x3xf32, #tpu.memory_space<vmem>>, %arg10: memref<64x32xf32, #tpu.memory_space<vmem>>) attributes {dimension_semantics = [], scalar_prefetch = 0 : i64, scratch_operands = 1 : i64, tpu.core_type = #tpu.core_type<tc>} {
    %c0 = arith.constant 0 : index
    %c0_0 = arith.constant 0 : index
    %0 = vector.load %arg1[%c0, %c0_0] : memref<32x96xf32, #tpu.memory_space<vmem>>, vector<32x96xf32>
    %c0_1 = arith.constant 0 : index
    %c0_2 = arith.constant 0 : index
    %1 = vector.load %arg2[%c0_1, %c0_2] : memref<1x96xf32, #tpu.memory_space<vmem>>, vector<1x96xf32>
    %cst = arith.constant 0.000000e+00 : f32
    %2 = vector.broadcast %cst : f32 to vector<8x32xf32>
    %c0_3 = arith.constant 0 : index
    %c0_4 = arith.constant 0 : index
    %c0_5 = arith.constant 0 : index
    %3 = vector.load %arg0[%c0_3, %c0_4, %c0_5] : memref<8x8x96xf32, #tpu.memory_space<vmem>>, vector<1x8x96xf32>
    %4 = vector.shape_cast %3 : vector<1x8x96xf32> to vector<8x96xf32>
    %cst_6 = arith.constant dense<0.000000e+00> : vector<8x96xf32>
    %5 = tpu.matmul %2, %0, %cst_6 {dimension_numbers = #tpu.dot_dimension_numbers<[1], [0], [0], [1], [0, 0, 1, 1], [], []>} : vector<8x32xf32>, vector<32x96xf32>, vector<8x96xf32> -> vector<8x96xf32>
    %6 = vector.broadcast %1 : vector<1x96xf32> to vector<8x96xf32>
    %7 = arith.addf %5, %6 : vector<8x96xf32>
    %8 = vector.extract_strided_slice %4 {offsets = [0, 0], sizes = [8, 32], strides = [1, 1]} : vector<8x96xf32> to vector<8x32xf32>
    %9 = vector.extract_strided_slice %7 {offsets = [0, 0], sizes = [8, 32], strides = [1, 1]} : vector<8x96xf32> to vector<8x32xf32>
    %10 = arith.addf %8, %9 : vector<8x32xf32>
    %11 = arith.negf %10 : vector<8x32xf32>
    %12 = math.exp %11 : vector<8x32xf32>
    %cst_7 = arith.constant 1.000000e+00 : f32
    %13 = vector.broadcast %cst_7 : f32 to vector<8x32xf32>
    %14 = arith.addf %13, %12 : vector<8x32xf32>
    %15 = arith.divf %13, %14 : vector<8x32xf32>
    %16 = vector.extract_strided_slice %4 {offsets = [0, 32], sizes = [8, 32], strides = [1, 1]} : vector<8x96xf32> to vector<8x32xf32>
    %17 = vector.extract_strided_slice %7 {offsets = [0, 32], sizes = [8, 32], strides = [1, 1]} : vector<8x96xf32> to vector<8x32xf32>
    %18 = arith.addf %16, %17 : vector<8x32xf32>
    %19 = arith.negf %18 : vector<8x32xf32>
    %20 = math.exp %19 : vector<8x32xf32>
    %cst_8 = arith.constant 1.000000e+00 : f32
    %21 = vector.broadcast %cst_8 : f32 to vector<8x32xf32>
    %22 = arith.addf %21, %20 : vector<8x32xf32>
    %23 = arith.divf %21, %22 : vector<8x32xf32>
    %24 = vector.extract_strided_slice %4 {offsets = [0, 64], sizes = [8, 32], strides = [1, 1]} : vector<8x96xf32> to vector<8x32xf32>
    %25 = vector.extract_strided_slice %7 {offsets = [0, 64], sizes = [8, 32], strides = [1, 1]} : vector<8x96xf32> to vector<8x32xf32>
    %26 = arith.mulf %15, %25 : vector<8x32xf32>
    %27 = arith.addf %24, %26 : vector<8x32xf32>
    %28 = math.tanh %27 : vector<8x32xf32>
    %29 = arith.subf %2, %28 : vector<8x32xf32>
    %30 = arith.mulf %23, %29 : vector<8x32xf32>
    %31 = arith.addf %28, %30 : vector<8x32xf32>
    %c0_9 = arith.constant 0 : index
    %c0_10 = arith.constant 0 : index
    %32 = vector.load %arg10[%c0_9, %c0_10] : memref<64x32xf32, #tpu.memory_space<vmem>>, vector<8x32xf32>
    tpu.vector_store %arg10[%c0_9, %c0_10], %31 {strides = array<i32>} : memref<64x32xf32, #tpu.memory_space<vmem>>, vector<8x32xf32>,
    %c1 = arith.constant 1 : index
    %c0_11 = arith.constant 0 : index
    %c0_12 = arith.constant 0 : index
    %33 = vector.load %arg0[%c1, %c0_11, %c0_12] : memref<8x8x96xf32, #tpu.memory_space<vmem>>, vector<1x8x96xf32>
    %34 = vector.shape_cast %33 : vector<1x8x96xf32> to vector<8x96xf32>
    %cst_13 = arith.constant dense<0.000000e+00> : vector<8x96xf32>
    %35 = tpu.matmul %31, %0, %cst_13 {dimension_numbers = #tpu.dot_dimension_numbers<[1], [0], [0], [1], [0, 0, 1, 1], [], []>} : vector<8x32xf32>, vector<32x96xf32>, vector<8x96xf32> -> vector<8x96xf32>
    %36 = vector.broadcast %1 : vector<1x96xf32> to vector<8x96xf32>
    %37 = arith.addf %35, %36 : vector<8x96xf32>
    %38 = vector.extract_strided_slice %34 {offsets = [0, 0], sizes = [8, 32], strides = [1, 1]} : vector<8x96xf32> to vector<8x32xf32>
    %39 = vector.extract_strided_slice %37 {offsets = [0, 0], sizes = [8, 32], strides = [1, 1]} : vector<8x96xf32> to vector<8x32xf32>
    %40 = arith.addf %38, %39 : vector<8x32xf32>
    %41 = arith.negf %40 : vector<8x32xf32>
    %42 = math.exp %41 : vector<8x32xf32>
    %cst_14 = arith.constant 1.000000e+00 : f32
    %43 = vector.broadcast %cst_14 : f32 to vector<8x32xf32>
    %44 = arith.addf %43, %42 : vector<8x32xf32>
    %45 = arith.divf %43, %44 : vector<8x32xf32>
    %46 = vector.extract_strided_slice %34 {offsets = [0, 32], sizes = [8, 32], strides = [1, 1]} : vector<8x96xf32> to vector<8x32xf32>
    %47 = vector.extract_strided_slice %37 {offsets = [0, 32], sizes = [8, 32], strides = [1, 1]} : vector<8x96xf32> to vector<8x32xf32>
    %48 = arith.addf %46, %47 : vector<8x32xf32>
    %49 = arith.negf %48 : vector<8x32xf32>
    %50 = math.exp %49 : vector<8x32xf32>
    %cst_15 = arith.constant 1.000000e+00 : f32
    %51 = vector.broadcast %cst_15 : f32 to vector<8x32xf32>
    %52 = arith.addf %51, %50 : vector<8x32xf32>
    %53 = arith.divf %51, %52 : vector<8x32xf32>
    %54 = vector.extract_strided_slice %34 {offsets = [0, 64], sizes = [8, 32], strides = [1, 1]} : vector<8x96xf32> to vector<8x32xf32>
    %55 = vector.extract_strided_slice %37 {offsets = [0, 64], sizes = [8, 32], strides = [1, 1]} : vector<8x96xf32> to vector<8x32xf32>
    %56 = arith.mulf %45, %55 : vector<8x32xf32>
    %57 = arith.addf %54, %56 : vector<8x32xf32>
    %58 = math.tanh %57 : vector<8x32xf32>
    %59 = arith.subf %31, %58 : vector<8x32xf32>
    %60 = arith.mulf %53, %59 : vector<8x32xf32>
    %61 = arith.addf %58, %60 : vector<8x32xf32>
    %c8 = arith.constant 8 : index
    %c0_16 = arith.constant 0 : index
    %62 = vector.load %arg10[%c8, %c0_16] : memref<64x32xf32, #tpu.memory_space<vmem>>, vector<8x32xf32>
    tpu.vector_store %arg10[%c8, %c0_16], %61 {strides = array<i32>} : memref<64x32xf32, #tpu.memory_space<vmem>>, vector<8x32xf32>,
    %c2 = arith.constant 2 : index
    %c0_17 = arith.constant 0 : index
    %c0_18 = arith.constant 0 : index
    %63 = vector.load %arg0[%c2, %c0_17, %c0_18] : memref<8x8x96xf32, #tpu.memory_space<vmem>>, vector<1x8x96xf32>
    %64 = vector.shape_cast %63 : vector<1x8x96xf32> to vector<8x96xf32>
    %cst_19 = arith.constant dense<0.000000e+00> : vector<8x96xf32>
    %65 = tpu.matmul %61, %0, %cst_19 {dimension_numbers = #tpu.dot_dimension_numbers<[1], [0], [0], [1], [0, 0, 1, 1], [], []>} : vector<8x32xf32>, vector<32x96xf32>, vector<8x96xf32> -> vector<8x96xf32>
    %66 = vector.broadcast %1 : vector<1x96xf32> to vector<8x96xf32>
    %67 = arith.addf %65, %66 : vector<8x96xf32>
    %68 = vector.extract_strided_slice %64 {offsets = [0, 0], sizes = [8, 32], strides = [1, 1]} : vector<8x96xf32> to vector<8x32xf32>
    %69 = vector.extract_strided_slice %67 {offsets = [0, 0], sizes = [8, 32], strides = [1, 1]} : vector<8x96xf32> to vector<8x32xf32>
    %70 = arith.addf %68, %69 : vector<8x32xf32>
    %71 = arith.negf %70 : vector<8x32xf32>
    %72 = math.exp %71 : vector<8x32xf32>
    %cst_20 = arith.constant 1.000000e+00 : f32
    %73 = vector.broadcast %cst_20 : f32 to vector<8x32xf32>
    %74 = arith.addf %73, %72 : vector<8x32xf32>
    %75 = arith.divf %73, %74 : vector<8x32xf32>
    %76 = vector.extract_strided_slice %64 {offsets = [0, 32], sizes = [8, 32], strides = [1, 1]} : vector<8x96xf32> to vector<8x32xf32>
    %77 = vector.extract_strided_slice %67 {offsets = [0, 32], sizes = [8, 32], strides = [1, 1]} : vector<8x96xf32> to vector<8x32xf32>
    %78 = arith.addf %76, %77 : vector<8x32xf32>
    %79 = arith.negf %78 : vector<8x32xf32>
    %80 = math.exp %79 : vector<8x32xf32>
    %cst_21 = arith.constant 1.000000e+00 : f32
    %81 = vector.broadcast %cst_21 : f32 to vector<8x32xf32>
    %82 = arith.addf %81, %80 : vector<8x32xf32>
    %83 = arith.divf %81, %82 : vector<8x32xf32>
    %84 = vector.extract_strided_slice %64 {offsets = [0, 64], sizes = [8, 32], strides = [1, 1]} : vector<8x96xf32> to vector<8x32xf32>
    %85 = vector.extract_strided_slice %67 {offsets = [0, 64], sizes = [8, 32], strides = [1, 1]} : vector<8x96xf32> to vector<8x32xf32>
    %86 = arith.mulf %75, %85 : vector<8x32xf32>
    %87 = arith.addf %84, %86 : vector<8x32xf32>
    %88 = math.tanh %87 : vector<8x32xf32>
    %89 = arith.subf %61, %88 : vector<8x32xf32>
    %90 = arith.mulf %83, %89 : vector<8x32xf32>
    %91 = arith.addf %88, %90 : vector<8x32xf32>
    %c16 = arith.constant 16 : index
    %c0_22 = arith.constant 0 : index
    %92 = vector.load %arg10[%c16, %c0_22] : memref<64x32xf32, #tpu.memory_space<vmem>>, vector<8x32xf32>
    tpu.vector_store %arg10[%c16, %c0_22], %91 {strides = array<i32>} : memref<64x32xf32, #tpu.memory_space<vmem>>, vector<8x32xf32>,
    %c3 = arith.constant 3 : index
    %c0_23 = arith.constant 0 : index
    %c0_24 = arith.constant 0 : index
    %93 = vector.load %arg0[%c3, %c0_23, %c0_24] : memref<8x8x96xf32, #tpu.memory_space<vmem>>, vector<1x8x96xf32>
    %94 = vector.shape_cast %93 : vector<1x8x96xf32> to vector<8x96xf32>
    %cst_25 = arith.constant dense<0.000000e+00> : vector<8x96xf32>
    %95 = tpu.matmul %91, %0, %cst_25 {dimension_numbers = #tpu.dot_dimension_numbers<[1], [0], [0], [1], [0, 0, 1, 1], [], []>} : vector<8x32xf32>, vector<32x96xf32>, vector<8x96xf32> -> vector<8x96xf32>
    %96 = vector.broadcast %1 : vector<1x96xf32> to vector<8x96xf32>
    %97 = arith.addf %95, %96 : vector<8x96xf32>
    %98 = vector.extract_strided_slice %94 {offsets = [0, 0], sizes = [8, 32], strides = [1, 1]} : vector<8x96xf32> to vector<8x32xf32>
    %99 = vector.extract_strided_slice %97 {offsets = [0, 0], sizes = [8, 32], strides = [1, 1]} : vector<8x96xf32> to vector<8x32xf32>
    %100 = arith.addf %98, %99 : vector<8x32xf32>
    %101 = arith.negf %100 : vector<8x32xf32>
    %102 = math.exp %101 : vector<8x32xf32>
    %cst_26 = arith.constant 1.000000e+00 : f32
    %103 = vector.broadcast %cst_26 : f32 to vector<8x32xf32>
    %104 = arith.addf %103, %102 : vector<8x32xf32>
    %105 = arith.divf %103, %104 : vector<8x32xf32>
    %106 = vector.extract_strided_slice %94 {offsets = [0, 32], sizes = [8, 32], strides = [1, 1]} : vector<8x96xf32> to vector<8x32xf32>
    %107 = vector.extract_strided_slice %97 {offsets = [0, 32], sizes = [8, 32], strides = [1, 1]} : vector<8x96xf32> to vector<8x32xf32>
    %108 = arith.addf %106, %107 : vector<8x32xf32>
    %109 = arith.negf %108 : vector<8x32xf32>
    %110 = math.exp %109 : vector<8x32xf32>
    %cst_27 = arith.constant 1.000000e+00 : f32
    %111 = vector.broadcast %cst_27 : f32 to vector<8x32xf32>
    %112 = arith.addf %111, %110 : vector<8x32xf32>
    %113 = arith.divf %111, %112 : vector<8x32xf32>
    %114 = vector.extract_strided_slice %94 {offsets = [0, 64], sizes = [8, 32], strides = [1, 1]} : vector<8x96xf32> to vector<8x32xf32>
    %115 = vector.extract_strided_slice %97 {offsets = [0, 64], sizes = [8, 32], strides = [1, 1]} : vector<8x96xf32> to vector<8x32xf32>
    %116 = arith.mulf %105, %115 : vector<8x32xf32>
    %117 = arith.addf %114, %116 : vector<8x32xf32>
    %118 = math.tanh %117 : vector<8x32xf32>
    %119 = arith.subf %91, %118 : vector<8x32xf32>
    %120 = arith.mulf %113, %119 : vector<8x32xf32>
    %121 = arith.addf %118, %120 : vector<8x32xf32>
    %c24 = arith.constant 24 : index
    %c0_28 = arith.constant 0 : index
    %122 = vector.load %arg10[%c24, %c0_28] : memref<64x32xf32, #tpu.memory_space<vmem>>, vector<8x32xf32>
    tpu.vector_store %arg10[%c24, %c0_28], %121 {strides = array<i32>} : memref<64x32xf32, #tpu.memory_space<vmem>>, vector<8x32xf32>,
    %c4 = arith.constant 4 : index
    %c0_29 = arith.constant 0 : index
    %c0_30 = arith.constant 0 : index
    %123 = vector.load %arg0[%c4, %c0_29, %c0_30] : memref<8x8x96xf32, #tpu.memory_space<vmem>>, vector<1x8x96xf32>
    %124 = vector.shape_cast %123 : vector<1x8x96xf32> to vector<8x96xf32>
    %cst_31 = arith.constant dense<0.000000e+00> : vector<8x96xf32>
    %125 = tpu.matmul %121, %0, %cst_31 {dimension_numbers = #tpu.dot_dimension_numbers<[1], [0], [0], [1], [0, 0, 1, 1], [], []>} : vector<8x32xf32>, vector<32x96xf32>, vector<8x96xf32> -> vector<8x96xf32>
    %126 = vector.broadcast %1 : vector<1x96xf32> to vector<8x96xf32>
    %127 = arith.addf %125, %126 : vector<8x96xf32>
    %128 = vector.extract_strided_slice %124 {offsets = [0, 0], sizes = [8, 32], strides = [1, 1]} : vector<8x96xf32> to vector<8x32xf32>
    %129 = vector.extract_strided_slice %127 {offsets = [0, 0], sizes = [8, 32], strides = [1, 1]} : vector<8x96xf32> to vector<8x32xf32>
    %130 = arith.addf %128, %129 : vector<8x32xf32>
    %131 = arith.negf %130 : vector<8x32xf32>
    %132 = math.exp %131 : vector<8x32xf32>
    %cst_32 = arith.constant 1.000000e+00 : f32
    %133 = vector.broadcast %cst_32 : f32 to vector<8x32xf32>
    %134 = arith.addf %133, %132 : vector<8x32xf32>
    %135 = arith.divf %133, %134 : vector<8x32xf32>
    %136 = vector.extract_strided_slice %124 {offsets = [0, 32], sizes = [8, 32], strides = [1, 1]} : vector<8x96xf32> to vector<8x32xf32>
    %137 = vector.extract_strided_slice %127 {offsets = [0, 32], sizes = [8, 32], strides = [1, 1]} : vector<8x96xf32> to vector<8x32xf32>
    %138 = arith.addf %136, %137 : vector<8x32xf32>
    %139 = arith.negf %138 : vector<8x32xf32>
    %140 = math.exp %139 : vector<8x32xf32>
    %cst_33 = arith.constant 1.000000e+00 : f32
    %141 = vector.broadcast %cst_33 : f32 to vector<8x32xf32>
    %142 = arith.addf %141, %140 : vector<8x32xf32>
    %143 = arith.divf %141, %142 : vector<8x32xf32>
    %144 = vector.extract_strided_slice %124 {offsets = [0, 64], sizes = [8, 32], strides = [1, 1]} : vector<8x96xf32> to vector<8x32xf32>
    %145 = vector.extract_strided_slice %127 {offsets = [0, 64], sizes = [8, 32], strides = [1, 1]} : vector<8x96xf32> to vector<8x32xf32>
    %146 = arith.mulf %135, %145 : vector<8x32xf32>
    %147 = arith.addf %144, %146 : vector<8x32xf32>
    %148 = math.tanh %147 : vector<8x32xf32>
    %149 = arith.subf %121, %148 : vector<8x32xf32>
    %150 = arith.mulf %143, %149 : vector<8x32xf32>
    %151 = arith.addf %148, %150 : vector<8x32xf32>
    %c32 = arith.constant 32 : index
    %c0_34 = arith.constant 0 : index
    %152 = vector.load %arg10[%c32, %c0_34] : memref<64x32xf32, #tpu.memory_space<vmem>>, vector<8x32xf32>
    tpu.vector_store %arg10[%c32, %c0_34], %151 {strides = array<i32>} : memref<64x32xf32, #tpu.memory_space<vmem>>, vector<8x32xf32>,
    %c5 = arith.constant 5 : index
    %c0_35 = arith.constant 0 : index
    %c0_36 = arith.constant 0 : index
    %153 = vector.load %arg0[%c5, %c0_35, %c0_36] : memref<8x8x96xf32, #tpu.memory_space<vmem>>, vector<1x8x96xf32>
    %154 = vector.shape_cast %153 : vector<1x8x96xf32> to vector<8x96xf32>
    %cst_37 = arith.constant dense<0.000000e+00> : vector<8x96xf32>
    %155 = tpu.matmul %151, %0, %cst_37 {dimension_numbers = #tpu.dot_dimension_numbers<[1], [0], [0], [1], [0, 0, 1, 1], [], []>} : vector<8x32xf32>, vector<32x96xf32>, vector<8x96xf32> -> vector<8x96xf32>
    %156 = vector.broadcast %1 : vector<1x96xf32> to vector<8x96xf32>
    %157 = arith.addf %155, %156 : vector<8x96xf32>
    %158 = vector.extract_strided_slice %154 {offsets = [0, 0], sizes = [8, 32], strides = [1, 1]} : vector<8x96xf32> to vector<8x32xf32>
    %159 = vector.extract_strided_slice %157 {offsets = [0, 0], sizes = [8, 32], strides = [1, 1]} : vector<8x96xf32> to vector<8x32xf32>
    %160 = arith.addf %158, %159 : vector<8x32xf32>
    %161 = arith.negf %160 : vector<8x32xf32>
    %162 = math.exp %161 : vector<8x32xf32>
    %cst_38 = arith.constant 1.000000e+00 : f32
    %163 = vector.broadcast %cst_38 : f32 to vector<8x32xf32>
    %164 = arith.addf %163, %162 : vector<8x32xf32>
    %165 = arith.divf %163, %164 : vector<8x32xf32>
    %166 = vector.extract_strided_slice %154 {offsets = [0, 32], sizes = [8, 32], strides = [1, 1]} : vector<8x96xf32> to vector<8x32xf32>
    %167 = vector.extract_strided_slice %157 {offsets = [0, 32], sizes = [8, 32], strides = [1, 1]} : vector<8x96xf32> to vector<8x32xf32>
    %168 = arith.addf %166, %167 : vector<8x32xf32>
    %169 = arith.negf %168 : vector<8x32xf32>
    %170 = math.exp %169 : vector<8x32xf32>
    %cst_39 = arith.constant 1.000000e+00 : f32
    %171 = vector.broadcast %cst_39 : f32 to vector<8x32xf32>
    %172 = arith.addf %171, %170 : vector<8x32xf32>
    %173 = arith.divf %171, %172 : vector<8x32xf32>
    %174 = vector.extract_strided_slice %154 {offsets = [0, 64], sizes = [8, 32], strides = [1, 1]} : vector<8x96xf32> to vector<8x32xf32>
    %175 = vector.extract_strided_slice %157 {offsets = [0, 64], sizes = [8, 32], strides = [1, 1]} : vector<8x96xf32> to vector<8x32xf32>
    %176 = arith.mulf %165, %175 : vector<8x32xf32>
    %177 = arith.addf %174, %176 : vector<8x32xf32>
    %178 = math.tanh %177 : vector<8x32xf32>
    %179 = arith.subf %151, %178 : vector<8x32xf32>
    %180 = arith.mulf %173, %179 : vector<8x32xf32>
    %181 = arith.addf %178, %180 : vector<8x32xf32>
    %c40 = arith.constant 40 : index
    %c0_40 = arith.constant 0 : index
    %182 = vector.load %arg10[%c40, %c0_40] : memref<64x32xf32, #tpu.memory_space<vmem>>, vector<8x32xf32>
    tpu.vector_store %arg10[%c40, %c0_40], %181 {strides = array<i32>} : memref<64x32xf32, #tpu.memory_space<vmem>>, vector<8x32xf32>,
    %c6 = arith.constant 6 : index
    %c0_41 = arith.constant 0 : index
    %c0_42 = arith.constant 0 : index
    %183 = vector.load %arg0[%c6, %c0_41, %c0_42] : memref<8x8x96xf32, #tpu.memory_space<vmem>>, vector<1x8x96xf32>
    %184 = vector.shape_cast %183 : vector<1x8x96xf32> to vector<8x96xf32>
    %cst_43 = arith.constant dense<0.000000e+00> : vector<8x96xf32>
    %185 = tpu.matmul %181, %0, %cst_43 {dimension_numbers = #tpu.dot_dimension_numbers<[1], [0], [0], [1], [0, 0, 1, 1], [], []>} : vector<8x32xf32>, vector<32x96xf32>, vector<8x96xf32> -> vector<8x96xf32>
    %186 = vector.broadcast %1 : vector<1x96xf32> to vector<8x96xf32>
    %187 = arith.addf %185, %186 : vector<8x96xf32>
    %188 = vector.extract_strided_slice %184 {offsets = [0, 0], sizes = [8, 32], strides = [1, 1]} : vector<8x96xf32> to vector<8x32xf32>
    %189 = vector.extract_strided_slice %187 {offsets = [0, 0], sizes = [8, 32], strides = [1, 1]} : vector<8x96xf32> to vector<8x32xf32>
    %190 = arith.addf %188, %189 : vector<8x32xf32>
    %191 = arith.negf %190 : vector<8x32xf32>
    %192 = math.exp %191 : vector<8x32xf32>
    %cst_44 = arith.constant 1.000000e+00 : f32
    %193 = vector.broadcast %cst_44 : f32 to vector<8x32xf32>
    %194 = arith.addf %193, %192 : vector<8x32xf32>
    %195 = arith.divf %193, %194 : vector<8x32xf32>
    %196 = vector.extract_strided_slice %184 {offsets = [0, 32], sizes = [8, 32], strides = [1, 1]} : vector<8x96xf32> to vector<8x32xf32>
    %197 = vector.extract_strided_slice %187 {offsets = [0, 32], sizes = [8, 32], strides = [1, 1]} : vector<8x96xf32> to vector<8x32xf32>
    %198 = arith.addf %196, %197 : vector<8x32xf32>
    %199 = arith.negf %198 : vector<8x32xf32>
    %200 = math.exp %199 : vector<8x32xf32>
    %cst_45 = arith.constant 1.000000e+00 : f32
    %201 = vector.broadcast %cst_45 : f32 to vector<8x32xf32>
    %202 = arith.addf %201, %200 : vector<8x32xf32>
    %203 = arith.divf %201, %202 : vector<8x32xf32>
    %204 = vector.extract_strided_slice %184 {offsets = [0, 64], sizes = [8, 32], strides = [1, 1]} : vector<8x96xf32> to vector<8x32xf32>
    %205 = vector.extract_strided_slice %187 {offsets = [0, 64], sizes = [8, 32], strides = [1, 1]} : vector<8x96xf32> to vector<8x32xf32>
    %206 = arith.mulf %195, %205 : vector<8x32xf32>
    %207 = arith.addf %204, %206 : vector<8x32xf32>
    %208 = math.tanh %207 : vector<8x32xf32>
    %209 = arith.subf %181, %208 : vector<8x32xf32>
    %210 = arith.mulf %203, %209 : vector<8x32xf32>
    %211 = arith.addf %208, %210 : vector<8x32xf32>
    %c48 = arith.constant 48 : index
    %c0_46 = arith.constant 0 : index
    %212 = vector.load %arg10[%c48, %c0_46] : memref<64x32xf32, #tpu.memory_space<vmem>>, vector<8x32xf32>
    tpu.vector_store %arg10[%c48, %c0_46], %211 {strides = array<i32>} : memref<64x32xf32, #tpu.memory_space<vmem>>, vector<8x32xf32>,
    %c7 = arith.constant 7 : index
    %c0_47 = arith.constant 0 : index
    %c0_48 = arith.constant 0 : index
    %213 = vector.load %arg0[%c7, %c0_47, %c0_48] : memref<8x8x96xf32, #tpu.memory_space<vmem>>, vector<1x8x96xf32>
    %214 = vector.shape_cast %213 : vector<1x8x96xf32> to vector<8x96xf32>
    %cst_49 = arith.constant dense<0.000000e+00> : vector<8x96xf32>
    %215 = tpu.matmul %211, %0, %cst_49 {dimension_numbers = #tpu.dot_dimension_numbers<[1], [0], [0], [1], [0, 0, 1, 1], [], []>} : vector<8x32xf32>, vector<32x96xf32>, vector<8x96xf32> -> vector<8x96xf32>
    %216 = vector.broadcast %1 : vector<1x96xf32> to vector<8x96xf32>
    %217 = arith.addf %215, %216 : vector<8x96xf32>
    %218 = vector.extract_strided_slice %214 {offsets = [0, 0], sizes = [8, 32], strides = [1, 1]} : vector<8x96xf32> to vector<8x32xf32>
    %219 = vector.extract_strided_slice %217 {offsets = [0, 0], sizes = [8, 32], strides = [1, 1]} : vector<8x96xf32> to vector<8x32xf32>
    %220 = arith.addf %218, %219 : vector<8x32xf32>
    %221 = arith.negf %220 : vector<8x32xf32>
    %222 = math.exp %221 : vector<8x32xf32>
    %cst_50 = arith.constant 1.000000e+00 : f32
    %223 = vector.broadcast %cst_50 : f32 to vector<8x32xf32>
    %224 = arith.addf %223, %222 : vector<8x32xf32>
    %225 = arith.divf %223, %224 : vector<8x32xf32>
    %226 = vector.extract_strided_slice %214 {offsets = [0, 32], sizes = [8, 32], strides = [1, 1]} : vector<8x96xf32> to vector<8x32xf32>
    %227 = vector.extract_strided_slice %217 {offsets = [0, 32], sizes = [8, 32], strides = [1, 1]} : vector<8x96xf32> to vector<8x32xf32>
    %228 = arith.addf %226, %227 : vector<8x32xf32>
    %229 = arith.negf %228 : vector<8x32xf32>
    %230 = math.exp %229 : vector<8x32xf32>
    %cst_51 = arith.constant 1.000000e+00 : f32
    %231 = vector.broadcast %cst_51 : f32 to vector<8x32xf32>
    %232 = arith.addf %231, %230 : vector<8x32xf32>
    %233 = arith.divf %231, %232 : vector<8x32xf32>
    %234 = vector.extract_strided_slice %214 {offsets = [0, 64], sizes = [8, 32], strides = [1, 1]} : vector<8x96xf32> to vector<8x32xf32>
    %235 = vector.extract_strided_slice %217 {offsets = [0, 64], sizes = [8, 32], strides = [1, 1]} : vector<8x96xf32> to vector<8x32xf32>
    %236 = arith.mulf %225, %235 : vector<8x32xf32>
    %237 = arith.addf %234, %236 : vector<8x32xf32>
    %238 = math.tanh %237 : vector<8x32xf32>
    %239 = arith.subf %211, %238 : vector<8x32xf32>
    %240 = arith.mulf %233, %239 : vector<8x32xf32>
    %241 = arith.addf %238, %240 : vector<8x32xf32>
    %c56 = arith.constant 56 : index
    %c0_52 = arith.constant 0 : index
    %242 = vector.load %arg10[%c56, %c0_52] : memref<64x32xf32, #tpu.memory_space<vmem>>, vector<8x32xf32>
    tpu.vector_store %arg10[%c56, %c0_52], %241 {strides = array<i32>} : memref<64x32xf32, #tpu.memory_space<vmem>>, vector<8x32xf32>,
    %c0_53 = arith.constant 0 : index
    %c0_54 = arith.constant 0 : index
    %243 = vector.load %arg3[%c0_53, %c0_54] : memref<32x96xf32, #tpu.memory_space<vmem>>, vector<32x96xf32>
    %c0_55 = arith.constant 0 : index
    %c0_56 = arith.constant 0 : index
    %244 = vector.load %arg4[%c0_55, %c0_56] : memref<1x96xf32, #tpu.memory_space<vmem>>, vector<1x96xf32>
    %c0_57 = arith.constant 0 : index
    %c0_58 = arith.constant 0 : index
    %245 = vector.load %arg5[%c0_57, %c0_58] : memref<32x96xf32, #tpu.memory_space<vmem>>, vector<32x96xf32>
    %c0_59 = arith.constant 0 : index
    %c0_60 = arith.constant 0 : index
    %246 = vector.load %arg6[%c0_59, %c0_60] : memref<1x96xf32, #tpu.memory_space<vmem>>, vector<1x96xf32>
    %c0_61 = arith.constant 0 : index
    %c0_62 = arith.constant 0 : index
    %247 = vector.load %arg10[%c0_61, %c0_62] : memref<64x32xf32, #tpu.memory_space<vmem>>, vector<64x32xf32>
    %cst_63 = arith.constant dense<0.000000e+00> : vector<64x96xf32>
    %248 = tpu.matmul %247, %243, %cst_63 {dimension_numbers = #tpu.dot_dimension_numbers<[1], [0], [0], [1], [0, 0, 1, 1], [], []>} : vector<64x32xf32>, vector<32x96xf32>, vector<64x96xf32> -> vector<64x96xf32>
    %249 = vector.broadcast %244 : vector<1x96xf32> to vector<64x96xf32>
    %250 = arith.addf %248, %249 : vector<64x96xf32>
    %cst_64 = arith.constant 0.000000e+00 : f32
    %251 = vector.broadcast %cst_64 : f32 to vector<8x32xf32>
    %252 = vector.extract_strided_slice %250 {offsets = [0, 0], sizes = [8, 96], strides = [1, 1]} : vector<64x96xf32> to vector<8x96xf32>
    %cst_65 = arith.constant dense<0.000000e+00> : vector<8x96xf32>
    %253 = tpu.matmul %251, %245, %cst_65 {dimension_numbers = #tpu.dot_dimension_numbers<[1], [0], [0], [1], [0, 0, 1, 1], [], []>} : vector<8x32xf32>, vector<32x96xf32>, vector<8x96xf32> -> vector<8x96xf32>
    %254 = vector.broadcast %246 : vector<1x96xf32> to vector<8x96xf32>
    %255 = arith.addf %253, %254 : vector<8x96xf32>
    %256 = vector.extract_strided_slice %252 {offsets = [0, 0], sizes = [8, 32], strides = [1, 1]} : vector<8x96xf32> to vector<8x32xf32>
    %257 = vector.extract_strided_slice %255 {offsets = [0, 0], sizes = [8, 32], strides = [1, 1]} : vector<8x96xf32> to vector<8x32xf32>
    %258 = arith.addf %256, %257 : vector<8x32xf32>
    %259 = arith.negf %258 : vector<8x32xf32>
    %260 = math.exp %259 : vector<8x32xf32>
    %cst_66 = arith.constant 1.000000e+00 : f32
    %261 = vector.broadcast %cst_66 : f32 to vector<8x32xf32>
    %262 = arith.addf %261, %260 : vector<8x32xf32>
    %263 = arith.divf %261, %262 : vector<8x32xf32>
    %264 = vector.extract_strided_slice %252 {offsets = [0, 32], sizes = [8, 32], strides = [1, 1]} : vector<8x96xf32> to vector<8x32xf32>
    %265 = vector.extract_strided_slice %255 {offsets = [0, 32], sizes = [8, 32], strides = [1, 1]} : vector<8x96xf32> to vector<8x32xf32>
    %266 = arith.addf %264, %265 : vector<8x32xf32>
    %267 = arith.negf %266 : vector<8x32xf32>
    %268 = math.exp %267 : vector<8x32xf32>
    %cst_67 = arith.constant 1.000000e+00 : f32
    %269 = vector.broadcast %cst_67 : f32 to vector<8x32xf32>
    %270 = arith.addf %269, %268 : vector<8x32xf32>
    %271 = arith.divf %269, %270 : vector<8x32xf32>
    %272 = vector.extract_strided_slice %252 {offsets = [0, 64], sizes = [8, 32], strides = [1, 1]} : vector<8x96xf32> to vector<8x32xf32>
    %273 = vector.extract_strided_slice %255 {offsets = [0, 64], sizes = [8, 32], strides = [1, 1]} : vector<8x96xf32> to vector<8x32xf32>
    %274 = arith.mulf %263, %273 : vector<8x32xf32>
    %275 = arith.addf %272, %274 : vector<8x32xf32>
    %276 = math.tanh %275 : vector<8x32xf32>
    %277 = arith.subf %251, %276 : vector<8x32xf32>
    %278 = arith.mulf %271, %277 : vector<8x32xf32>
    %279 = arith.addf %276, %278 : vector<8x32xf32>
    %280 = vector.extract_strided_slice %250 {offsets = [8, 0], sizes = [8, 96], strides = [1, 1]} : vector<64x96xf32> to vector<8x96xf32>
    %cst_68 = arith.constant dense<0.000000e+00> : vector<8x96xf32>
    %281 = tpu.matmul %279, %245, %cst_68 {dimension_numbers = #tpu.dot_dimension_numbers<[1], [0], [0], [1], [0, 0, 1, 1], [], []>} : vector<8x32xf32>, vector<32x96xf32>, vector<8x96xf32> -> vector<8x96xf32>
    %282 = vector.broadcast %246 : vector<1x96xf32> to vector<8x96xf32>
    %283 = arith.addf %281, %282 : vector<8x96xf32>
    %284 = vector.extract_strided_slice %280 {offsets = [0, 0], sizes = [8, 32], strides = [1, 1]} : vector<8x96xf32> to vector<8x32xf32>
    %285 = vector.extract_strided_slice %283 {offsets = [0, 0], sizes = [8, 32], strides = [1, 1]} : vector<8x96xf32> to vector<8x32xf32>
    %286 = arith.addf %284, %285 : vector<8x32xf32>
    %287 = arith.negf %286 : vector<8x32xf32>
    %288 = math.exp %287 : vector<8x32xf32>
    %cst_69 = arith.constant 1.000000e+00 : f32
    %289 = vector.broadcast %cst_69 : f32 to vector<8x32xf32>
    %290 = arith.addf %289, %288 : vector<8x32xf32>
    %291 = arith.divf %289, %290 : vector<8x32xf32>
    %292 = vector.extract_strided_slice %280 {offsets = [0, 32], sizes = [8, 32], strides = [1, 1]} : vector<8x96xf32> to vector<8x32xf32>
    %293 = vector.extract_strided_slice %283 {offsets = [0, 32], sizes = [8, 32], strides = [1, 1]} : vector<8x96xf32> to vector<8x32xf32>
    %294 = arith.addf %292, %293 : vector<8x32xf32>
    %295 = arith.negf %294 : vector<8x32xf32>
    %296 = math.exp %295 : vector<8x32xf32>
    %cst_70 = arith.constant 1.000000e+00 : f32
    %297 = vector.broadcast %cst_70 : f32 to vector<8x32xf32>
    %298 = arith.addf %297, %296 : vector<8x32xf32>
    %299 = arith.divf %297, %298 : vector<8x32xf32>
    %300 = vector.extract_strided_slice %280 {offsets = [0, 64], sizes = [8, 32], strides = [1, 1]} : vector<8x96xf32> to vector<8x32xf32>
    %301 = vector.extract_strided_slice %283 {offsets = [0, 64], sizes = [8, 32], strides = [1, 1]} : vector<8x96xf32> to vector<8x32xf32>
    %302 = arith.mulf %291, %301 : vector<8x32xf32>
    %303 = arith.addf %300, %302 : vector<8x32xf32>
    %304 = math.tanh %303 : vector<8x32xf32>
    %305 = arith.subf %279, %304 : vector<8x32xf32>
    %306 = arith.mulf %299, %305 : vector<8x32xf32>
    %307 = arith.addf %304, %306 : vector<8x32xf32>
    %308 = vector.extract_strided_slice %250 {offsets = [16, 0], sizes = [8, 96], strides = [1, 1]} : vector<64x96xf32> to vector<8x96xf32>
    %cst_71 = arith.constant dense<0.000000e+00> : vector<8x96xf32>
    %309 = tpu.matmul %307, %245, %cst_71 {dimension_numbers = #tpu.dot_dimension_numbers<[1], [0], [0], [1], [0, 0, 1, 1], [], []>} : vector<8x32xf32>, vector<32x96xf32>, vector<8x96xf32> -> vector<8x96xf32>
    %310 = vector.broadcast %246 : vector<1x96xf32> to vector<8x96xf32>
    %311 = arith.addf %309, %310 : vector<8x96xf32>
    %312 = vector.extract_strided_slice %308 {offsets = [0, 0], sizes = [8, 32], strides = [1, 1]} : vector<8x96xf32> to vector<8x32xf32>
    %313 = vector.extract_strided_slice %311 {offsets = [0, 0], sizes = [8, 32], strides = [1, 1]} : vector<8x96xf32> to vector<8x32xf32>
    %314 = arith.addf %312, %313 : vector<8x32xf32>
    %315 = arith.negf %314 : vector<8x32xf32>
    %316 = math.exp %315 : vector<8x32xf32>
    %cst_72 = arith.constant 1.000000e+00 : f32
    %317 = vector.broadcast %cst_72 : f32 to vector<8x32xf32>
    %318 = arith.addf %317, %316 : vector<8x32xf32>
    %319 = arith.divf %317, %318 : vector<8x32xf32>
    %320 = vector.extract_strided_slice %308 {offsets = [0, 32], sizes = [8, 32], strides = [1, 1]} : vector<8x96xf32> to vector<8x32xf32>
    %321 = vector.extract_strided_slice %311 {offsets = [0, 32], sizes = [8, 32], strides = [1, 1]} : vector<8x96xf32> to vector<8x32xf32>
    %322 = arith.addf %320, %321 : vector<8x32xf32>
    %323 = arith.negf %322 : vector<8x32xf32>
    %324 = math.exp %323 : vector<8x32xf32>
    %cst_73 = arith.constant 1.000000e+00 : f32
    %325 = vector.broadcast %cst_73 : f32 to vector<8x32xf32>
    %326 = arith.addf %325, %324 : vector<8x32xf32>
    %327 = arith.divf %325, %326 : vector<8x32xf32>
    %328 = vector.extract_strided_slice %308 {offsets = [0, 64], sizes = [8, 32], strides = [1, 1]} : vector<8x96xf32> to vector<8x32xf32>
    %329 = vector.extract_strided_slice %311 {offsets = [0, 64], sizes = [8, 32], strides = [1, 1]} : vector<8x96xf32> to vector<8x32xf32>
    %330 = arith.mulf %319, %329 : vector<8x32xf32>
    %331 = arith.addf %328, %330 : vector<8x32xf32>
    %332 = math.tanh %331 : vector<8x32xf32>
    %333 = arith.subf %307, %332 : vector<8x32xf32>
    %334 = arith.mulf %327, %333 : vector<8x32xf32>
    %335 = arith.addf %332, %334 : vector<8x32xf32>
    %336 = vector.extract_strided_slice %250 {offsets = [24, 0], sizes = [8, 96], strides = [1, 1]} : vector<64x96xf32> to vector<8x96xf32>
    %cst_74 = arith.constant dense<0.000000e+00> : vector<8x96xf32>
    %337 = tpu.matmul %335, %245, %cst_74 {dimension_numbers = #tpu.dot_dimension_numbers<[1], [0], [0], [1], [0, 0, 1, 1], [], []>} : vector<8x32xf32>, vector<32x96xf32>, vector<8x96xf32> -> vector<8x96xf32>
    %338 = vector.broadcast %246 : vector<1x96xf32> to vector<8x96xf32>
    %339 = arith.addf %337, %338 : vector<8x96xf32>
    %340 = vector.extract_strided_slice %336 {offsets = [0, 0], sizes = [8, 32], strides = [1, 1]} : vector<8x96xf32> to vector<8x32xf32>
    %341 = vector.extract_strided_slice %339 {offsets = [0, 0], sizes = [8, 32], strides = [1, 1]} : vector<8x96xf32> to vector<8x32xf32>
    %342 = arith.addf %340, %341 : vector<8x32xf32>
    %343 = arith.negf %342 : vector<8x32xf32>
    %344 = math.exp %343 : vector<8x32xf32>
    %cst_75 = arith.constant 1.000000e+00 : f32
    %345 = vector.broadcast %cst_75 : f32 to vector<8x32xf32>
    %346 = arith.addf %345, %344 : vector<8x32xf32>
    %347 = arith.divf %345, %346 : vector<8x32xf32>
    %348 = vector.extract_strided_slice %336 {offsets = [0, 32], sizes = [8, 32], strides = [1, 1]} : vector<8x96xf32> to vector<8x32xf32>
    %349 = vector.extract_strided_slice %339 {offsets = [0, 32], sizes = [8, 32], strides = [1, 1]} : vector<8x96xf32> to vector<8x32xf32>
    %350 = arith.addf %348, %349 : vector<8x32xf32>
    %351 = arith.negf %350 : vector<8x32xf32>
    %352 = math.exp %351 : vector<8x32xf32>
    %cst_76 = arith.constant 1.000000e+00 : f32
    %353 = vector.broadcast %cst_76 : f32 to vector<8x32xf32>
    %354 = arith.addf %353, %352 : vector<8x32xf32>
    %355 = arith.divf %353, %354 : vector<8x32xf32>
    %356 = vector.extract_strided_slice %336 {offsets = [0, 64], sizes = [8, 32], strides = [1, 1]} : vector<8x96xf32> to vector<8x32xf32>
    %357 = vector.extract_strided_slice %339 {offsets = [0, 64], sizes = [8, 32], strides = [1, 1]} : vector<8x96xf32> to vector<8x32xf32>
    %358 = arith.mulf %347, %357 : vector<8x32xf32>
    %359 = arith.addf %356, %358 : vector<8x32xf32>
    %360 = math.tanh %359 : vector<8x32xf32>
    %361 = arith.subf %335, %360 : vector<8x32xf32>
    %362 = arith.mulf %355, %361 : vector<8x32xf32>
    %363 = arith.addf %360, %362 : vector<8x32xf32>
    %364 = vector.extract_strided_slice %250 {offsets = [32, 0], sizes = [8, 96], strides = [1, 1]} : vector<64x96xf32> to vector<8x96xf32>
    %cst_77 = arith.constant dense<0.000000e+00> : vector<8x96xf32>
    %365 = tpu.matmul %363, %245, %cst_77 {dimension_numbers = #tpu.dot_dimension_numbers<[1], [0], [0], [1], [0, 0, 1, 1], [], []>} : vector<8x32xf32>, vector<32x96xf32>, vector<8x96xf32> -> vector<8x96xf32>
    %366 = vector.broadcast %246 : vector<1x96xf32> to vector<8x96xf32>
    %367 = arith.addf %365, %366 : vector<8x96xf32>
    %368 = vector.extract_strided_slice %364 {offsets = [0, 0], sizes = [8, 32], strides = [1, 1]} : vector<8x96xf32> to vector<8x32xf32>
    %369 = vector.extract_strided_slice %367 {offsets = [0, 0], sizes = [8, 32], strides = [1, 1]} : vector<8x96xf32> to vector<8x32xf32>
    %370 = arith.addf %368, %369 : vector<8x32xf32>
    %371 = arith.negf %370 : vector<8x32xf32>
    %372 = math.exp %371 : vector<8x32xf32>
    %cst_78 = arith.constant 1.000000e+00 : f32
    %373 = vector.broadcast %cst_78 : f32 to vector<8x32xf32>
    %374 = arith.addf %373, %372 : vector<8x32xf32>
    %375 = arith.divf %373, %374 : vector<8x32xf32>
    %376 = vector.extract_strided_slice %364 {offsets = [0, 32], sizes = [8, 32], strides = [1, 1]} : vector<8x96xf32> to vector<8x32xf32>
    %377 = vector.extract_strided_slice %367 {offsets = [0, 32], sizes = [8, 32], strides = [1, 1]} : vector<8x96xf32> to vector<8x32xf32>
    %378 = arith.addf %376, %377 : vector<8x32xf32>
    %379 = arith.negf %378 : vector<8x32xf32>
    %380 = math.exp %379 : vector<8x32xf32>
    %cst_79 = arith.constant 1.000000e+00 : f32
    %381 = vector.broadcast %cst_79 : f32 to vector<8x32xf32>
    %382 = arith.addf %381, %380 : vector<8x32xf32>
    %383 = arith.divf %381, %382 : vector<8x32xf32>
    %384 = vector.extract_strided_slice %364 {offsets = [0, 64], sizes = [8, 32], strides = [1, 1]} : vector<8x96xf32> to vector<8x32xf32>
    %385 = vector.extract_strided_slice %367 {offsets = [0, 64], sizes = [8, 32], strides = [1, 1]} : vector<8x96xf32> to vector<8x32xf32>
    %386 = arith.mulf %375, %385 : vector<8x32xf32>
    %387 = arith.addf %384, %386 : vector<8x32xf32>
    %388 = math.tanh %387 : vector<8x32xf32>
    %389 = arith.subf %363, %388 : vector<8x32xf32>
    %390 = arith.mulf %383, %389 : vector<8x32xf32>
    %391 = arith.addf %388, %390 : vector<8x32xf32>
    %392 = vector.extract_strided_slice %250 {offsets = [40, 0], sizes = [8, 96], strides = [1, 1]} : vector<64x96xf32> to vector<8x96xf32>
    %cst_80 = arith.constant dense<0.000000e+00> : vector<8x96xf32>
    %393 = tpu.matmul %391, %245, %cst_80 {dimension_numbers = #tpu.dot_dimension_numbers<[1], [0], [0], [1], [0, 0, 1, 1], [], []>} : vector<8x32xf32>, vector<32x96xf32>, vector<8x96xf32> -> vector<8x96xf32>
    %394 = vector.broadcast %246 : vector<1x96xf32> to vector<8x96xf32>
    %395 = arith.addf %393, %394 : vector<8x96xf32>
    %396 = vector.extract_strided_slice %392 {offsets = [0, 0], sizes = [8, 32], strides = [1, 1]} : vector<8x96xf32> to vector<8x32xf32>
    %397 = vector.extract_strided_slice %395 {offsets = [0, 0], sizes = [8, 32], strides = [1, 1]} : vector<8x96xf32> to vector<8x32xf32>
    %398 = arith.addf %396, %397 : vector<8x32xf32>
    %399 = arith.negf %398 : vector<8x32xf32>
    %400 = math.exp %399 : vector<8x32xf32>
    %cst_81 = arith.constant 1.000000e+00 : f32
    %401 = vector.broadcast %cst_81 : f32 to vector<8x32xf32>
    %402 = arith.addf %401, %400 : vector<8x32xf32>
    %403 = arith.divf %401, %402 : vector<8x32xf32>
    %404 = vector.extract_strided_slice %392 {offsets = [0, 32], sizes = [8, 32], strides = [1, 1]} : vector<8x96xf32> to vector<8x32xf32>
    %405 = vector.extract_strided_slice %395 {offsets = [0, 32], sizes = [8, 32], strides = [1, 1]} : vector<8x96xf32> to vector<8x32xf32>
    %406 = arith.addf %404, %405 : vector<8x32xf32>
    %407 = arith.negf %406 : vector<8x32xf32>
    %408 = math.exp %407 : vector<8x32xf32>
    %cst_82 = arith.constant 1.000000e+00 : f32
    %409 = vector.broadcast %cst_82 : f32 to vector<8x32xf32>
    %410 = arith.addf %409, %408 : vector<8x32xf32>
    %411 = arith.divf %409, %410 : vector<8x32xf32>
    %412 = vector.extract_strided_slice %392 {offsets = [0, 64], sizes = [8, 32], strides = [1, 1]} : vector<8x96xf32> to vector<8x32xf32>
    %413 = vector.extract_strided_slice %395 {offsets = [0, 64], sizes = [8, 32], strides = [1, 1]} : vector<8x96xf32> to vector<8x32xf32>
    %414 = arith.mulf %403, %413 : vector<8x32xf32>
    %415 = arith.addf %412, %414 : vector<8x32xf32>
    %416 = math.tanh %415 : vector<8x32xf32>
    %417 = arith.subf %391, %416 : vector<8x32xf32>
    %418 = arith.mulf %411, %417 : vector<8x32xf32>
    %419 = arith.addf %416, %418 : vector<8x32xf32>
    %420 = vector.extract_strided_slice %250 {offsets = [48, 0], sizes = [8, 96], strides = [1, 1]} : vector<64x96xf32> to vector<8x96xf32>
    %cst_83 = arith.constant dense<0.000000e+00> : vector<8x96xf32>
    %421 = tpu.matmul %419, %245, %cst_83 {dimension_numbers = #tpu.dot_dimension_numbers<[1], [0], [0], [1], [0, 0, 1, 1], [], []>} : vector<8x32xf32>, vector<32x96xf32>, vector<8x96xf32> -> vector<8x96xf32>
    %422 = vector.broadcast %246 : vector<1x96xf32> to vector<8x96xf32>
    %423 = arith.addf %421, %422 : vector<8x96xf32>
    %424 = vector.extract_strided_slice %420 {offsets = [0, 0], sizes = [8, 32], strides = [1, 1]} : vector<8x96xf32> to vector<8x32xf32>
    %425 = vector.extract_strided_slice %423 {offsets = [0, 0], sizes = [8, 32], strides = [1, 1]} : vector<8x96xf32> to vector<8x32xf32>
    %426 = arith.addf %424, %425 : vector<8x32xf32>
    %427 = arith.negf %426 : vector<8x32xf32>
    %428 = math.exp %427 : vector<8x32xf32>
    %cst_84 = arith.constant 1.000000e+00 : f32
    %429 = vector.broadcast %cst_84 : f32 to vector<8x32xf32>
    %430 = arith.addf %429, %428 : vector<8x32xf32>
    %431 = arith.divf %429, %430 : vector<8x32xf32>
    %432 = vector.extract_strided_slice %420 {offsets = [0, 32], sizes = [8, 32], strides = [1, 1]} : vector<8x96xf32> to vector<8x32xf32>
    %433 = vector.extract_strided_slice %423 {offsets = [0, 32], sizes = [8, 32], strides = [1, 1]} : vector<8x96xf32> to vector<8x32xf32>
    %434 = arith.addf %432, %433 : vector<8x32xf32>
    %435 = arith.negf %434 : vector<8x32xf32>
    %436 = math.exp %435 : vector<8x32xf32>
    %cst_85 = arith.constant 1.000000e+00 : f32
    %437 = vector.broadcast %cst_85 : f32 to vector<8x32xf32>
    %438 = arith.addf %437, %436 : vector<8x32xf32>
    %439 = arith.divf %437, %438 : vector<8x32xf32>
    %440 = vector.extract_strided_slice %420 {offsets = [0, 64], sizes = [8, 32], strides = [1, 1]} : vector<8x96xf32> to vector<8x32xf32>
    %441 = vector.extract_strided_slice %423 {offsets = [0, 64], sizes = [8, 32], strides = [1, 1]} : vector<8x96xf32> to vector<8x32xf32>
    %442 = arith.mulf %431, %441 : vector<8x32xf32>
    %443 = arith.addf %440, %442 : vector<8x32xf32>
    %444 = math.tanh %443 : vector<8x32xf32>
    %445 = arith.subf %419, %444 : vector<8x32xf32>
    %446 = arith.mulf %439, %445 : vector<8x32xf32>
    %447 = arith.addf %444, %446 : vector<8x32xf32>
    %448 = vector.extract_strided_slice %250 {offsets = [56, 0], sizes = [8, 96], strides = [1, 1]} : vector<64x96xf32> to vector<8x96xf32>
    %cst_86 = arith.constant dense<0.000000e+00> : vector<8x96xf32>
    %449 = tpu.matmul %447, %245, %cst_86 {dimension_numbers = #tpu.dot_dimension_numbers<[1], [0], [0], [1], [0, 0, 1, 1], [], []>} : vector<8x32xf32>, vector<32x96xf32>, vector<8x96xf32> -> vector<8x96xf32>
    %450 = vector.broadcast %246 : vector<1x96xf32> to vector<8x96xf32>
    %451 = arith.addf %449, %450 : vector<8x96xf32>
    %452 = vector.extract_strided_slice %448 {offsets = [0, 0], sizes = [8, 32], strides = [1, 1]} : vector<8x96xf32> to vector<8x32xf32>
    %453 = vector.extract_strided_slice %451 {offsets = [0, 0], sizes = [8, 32], strides = [1, 1]} : vector<8x96xf32> to vector<8x32xf32>
    %454 = arith.addf %452, %453 : vector<8x32xf32>
    %455 = arith.negf %454 : vector<8x32xf32>
    %456 = math.exp %455 : vector<8x32xf32>
    %cst_87 = arith.constant 1.000000e+00 : f32
    %457 = vector.broadcast %cst_87 : f32 to vector<8x32xf32>
    %458 = arith.addf %457, %456 : vector<8x32xf32>
    %459 = arith.divf %457, %458 : vector<8x32xf32>
    %460 = vector.extract_strided_slice %448 {offsets = [0, 32], sizes = [8, 32], strides = [1, 1]} : vector<8x96xf32> to vector<8x32xf32>
    %461 = vector.extract_strided_slice %451 {offsets = [0, 32], sizes = [8, 32], strides = [1, 1]} : vector<8x96xf32> to vector<8x32xf32>
    %462 = arith.addf %460, %461 : vector<8x32xf32>
    %463 = arith.negf %462 : vector<8x32xf32>
    %464 = math.exp %463 : vector<8x32xf32>
    %cst_88 = arith.constant 1.000000e+00 : f32
    %465 = vector.broadcast %cst_88 : f32 to vector<8x32xf32>
    %466 = arith.addf %465, %464 : vector<8x32xf32>
    %467 = arith.divf %465, %466 : vector<8x32xf32>
    %468 = vector.extract_strided_slice %448 {offsets = [0, 64], sizes = [8, 32], strides = [1, 1]} : vector<8x96xf32> to vector<8x32xf32>
    %469 = vector.extract_strided_slice %451 {offsets = [0, 64], sizes = [8, 32], strides = [1, 1]} : vector<8x96xf32> to vector<8x32xf32>
    %470 = arith.mulf %459, %469 : vector<8x32xf32>
    %471 = arith.addf %468, %470 : vector<8x32xf32>
    %472 = math.tanh %471 : vector<8x32xf32>
    %473 = arith.subf %447, %472 : vector<8x32xf32>
    %474 = arith.mulf %467, %473 : vector<8x32xf32>
    %475 = arith.addf %472, %474 : vector<8x32xf32>
    %c0_89 = arith.constant 0 : index
    %c0_90 = arith.constant 0 : index
    %476 = vector.load %arg7[%c0_89, %c0_90] : memref<32x3xf32, #tpu.memory_space<vmem>>, vector<32x3xf32>
    %cst_91 = arith.constant dense<0.000000e+00> : vector<8x3xf32>
    %477 = tpu.matmul %475, %476, %cst_91 {dimension_numbers = #tpu.dot_dimension_numbers<[1], [0], [0], [1], [0, 0, 1, 1], [], []>} : vector<8x32xf32>, vector<32x3xf32>, vector<8x3xf32> -> vector<8x3xf32>
    %c0_92 = arith.constant 0 : index
    %c0_93 = arith.constant 0 : index
    %478 = vector.load %arg8[%c0_92, %c0_93] : memref<1x3xf32, #tpu.memory_space<vmem>>, vector<1x3xf32>
    %479 = vector.broadcast %478 : vector<1x3xf32> to vector<8x3xf32>
    %480 = arith.addf %477, %479 : vector<8x3xf32>
    %c0_94 = arith.constant 0 : index
    %c0_95 = arith.constant 0 : index
    %481 = vector.load %arg9[%c0_94, %c0_95] : memref<8x3xf32, #tpu.memory_space<vmem>>, vector<8x3xf32>
    tpu.vector_store %arg9[%c0_94, %c0_95], %480 {strides = array<i32>} : memref<8x3xf32, #tpu.memory_space<vmem>>, vector<8x3xf32>,
    return
  }
}

</mosaic_0001>

<bundles_post_ra>
// kernel: forward.1
= control target key start
LH: loop header
LB: loop body
LE: loop exit
PB: predicated region body
PF: predicated region fallthrough
CT: control target
= control target key end

     0   :  { %v2441_v0 = vmov 0.0   ;;  %vm2442_vm0 = vmmov 0   ;;  %s2443_s18 = smov 64   ;;  %s2445_s21 = smov 32   ;;  %vm44_vm1 = vcmask 261120   ;;  %vm1980_vm2 = vcmask 23552   ;;  %s2927_s1 = inlined_call_operand.vmem [shape: f32[32,96], index: 1, kind: input, shape index: {}]   ;;  %s2928_s2 = inlined_call_operand.vmem [shape: f32[1,96], index: 2, kind: input, shape index: {}]   ;;  %s2929_s0 = inlined_call_operand.vmem [shape: f32[8,8,96], index: 0, kind: input, shape index: {}]   ;;  %s2930_s3 = inlined_call_operand.vmem [shape: f32[32,96], index: 3, kind: input, shape index: {}]   ;;  %s2931_s5 = inlined_call_operand.vmem [shape: f32[32,96], index: 5, kind: input, shape index: {}]   ;;  %s2932_s6 = inlined_call_operand.vmem [shape: f32[1,96], index: 6, kind: input, shape index: {}]   ;;  %s2933_s4 = inlined_call_operand.vmem [shape: f32[1,96], index: 4, kind: input, shape index: {}]   ;;  %s2934_s7 = inlined_call_operand.vmem [shape: f32[32,3], index: 7, kind: input, shape index: {}]   ;;  %s2935_s8 = inlined_call_operand.vmem [shape: f32[1,3], index: 8, kind: input, shape index: {}]   ;;  %s2936_s9 = inlined_call_operand.vmem [shape: f32[8,3], index: 9, kind: output, shape index: {}]  }
   0x1   :  { %2133 = vmatprep.subr.mxu0 %v2441_v0  ;;  %v2500_v1 = vld [vmem:[%s2927_s1 + $0x18] sm:$0xff]  ;;  %v2505_v2 = vld [vmem:[%s2927_s1 + $0x10] sm:$0xff]  ;;  %2141 = vmatprep.mubr.msk.f32.mxu0 %vm2442_vm0, %v2441_v0  ;;  %v2515_v3 = vld [vmem:[%s2927_s1 + $0x8] sm:$0xff] }
   0x2   :  { %2134 = vmatpush3.msra.mxu0 %v2500_v1  ;;  %2144 = vmatprep.subr.mxu1 %v2441_v0  ;;  %v2524_v4 = vld [vmem:[%s2927_s1] sm:$0xff]  ;;  %v1988_v29 = vld [vmem:[%s2929_s0 + $0x8] sm:$0xff]  ;;  %v1991_v49 = vld [vmem:[%s2929_s0 + $0x10] sm:$0xff] }
   0x3   :  { %2135 = vmatprep.subr.mxu0 %v2441_v0  ;;  %2145 = vmatpush3.msra.mxu1 %v2500_v1  ;;  %v2552_v5 = vld [vmem:[%s2928_s2] ss:$0 sm:$0xff]  ;;  %s2444_s2 = smov 96  }
   0x4   :  { %2136 = vmatpush3.msra.mxu0 %v2505_v2  ;;  %2146 = vmatprep.subr.mxu1 %v2441_v0  ;;  %v37_v9 = vld [vmem:[%s2929_s0] sm:$0xff] }
   0x5   :  { %2137 = vmatprep.subr.mxu0 %v2441_v0  ;;  %2147 = vmatpush3.msra.mxu1 %v2505_v2 }
   0x6   :  { %2138 = vmatpush3.msra.mxu0 %v2515_v3  ;;  %2148 = vmatprep.subr.mxu1 %v2441_v0 }
   0x7   :  { %2139 = vmatprep.subr.mxu0 %v2441_v0  ;;  %2149 = vmatpush3.msra.mxu1 %v2515_v3 }
   0x8   :  { %2140 = vmatpush3.msra.mxu0 %v2524_v4  ;;  %2150 = vmatprep.subr.mxu1 %v2441_v0 }
   0x9   :  { %2142 = vmatmul.mubr.f32.vlgmr.msra.gmra.mxu0 %v2441_v0  ;;  %2151 = vmatpush3.msra.mxu1 %v2524_v4 }
   0xa   :  { %2152 = vmatprep.mubr.msk.f32.mxu1 %vm2442_vm0, %v2441_v0  ;;  %2155 = vmatprep.subr.mxu0 %v2441_v0 }
   0xb   :  { %2156 = vmatpush3.msra.mxu0 %v2500_v1  ;;  %2163 = vmatprep.mubr.msk.f32.mxu0 %vm2442_vm0, %v2441_v0 }
   0xc   :  { %2157 = vmatprep.subr.mxu0 %v2441_v0  ;;  %2166 = vmatprep.subr.mxu1 %v2441_v0 }
   0xd   :  { %2158 = vmatpush3.msra.mxu0 %v2505_v2 }
   0xe   :  { %2159 = vmatprep.subr.mxu0 %v2441_v0 }
   0xf   :  { %2160 = vmatpush3.msra.mxu0 %v2515_v3 }
  0x10   :  { %2161 = vmatprep.subr.mxu0 %v2441_v0 }
  0x11   :  { %2162 = vmatpush3.msra.mxu0 %v2524_v4 }
  0x12   :  { %2177 = vmatprep.subr.mxu0 %v2441_v0 }
  0xc9   :  { %v114_v6 = vpop.f32.mrf.mxu0 }
  0xca   :  { %v115_v7 = vadd.f32 %v2552_v5, %v114_v6 }
  0xcb   :  { %v2143_v8 = vpop.f32.mrf.mxu0 }
  0xcc   :  { %126 = vrot.lane.b32.xlu0 %v115_v7, %s2443_s18  ;;  %v118_v10 = vadd.f32 %v115_v7, %v37_v9 }
  0xce   :  { %v1987_v11 = vmul.f32 -1.442695, %v118_v10 }
  0xd0   :  { %2345 = vpow2.f32 %v1987_v11  ;;  %v1994_v11 = vld [vmem:[%s2929_s0 + $0x18] sm:$0xff] }
  0xdd   :  { %v2346_v12 = vpop.eup %2345 }
  0xde   :  { %v122_v13 = vadd.f32 1.0, %v2346_v12 }
  0xe0   :  { %2347 = vrcp.f32 %v122_v13 }
  0xed   :  { %v2348_v14 = vpop.eup %2347 }
 0x13e   :  { %v127_v15 = vpop.permute.xlu0 %126 }
 0x13f   :  { %v129_v16 = vmul.f32 %v2348_v14, %v127_v15 }
 0x141   :  { %131 = vrot.lane.b32.xlu0 %v129_v16, %s2443_s18 }
 0x1b3   :  { %v132_v17 = vpop.permute.xlu0 %131 }
 0x1b4   :  { %v134_v18 = vadd.f32 %v132_v17, %v37_v9 }
 0x1b6   :  { %2349 = vtanh.f32 %v134_v18 }
 0x1c3   :  { %v2350_v19 = vpop.eup %2349 }
 0x1c4   :  { %v136_v20 = vsub.f32 0.0, %v2350_v19 }
 0x1c6   :  { %138 = vrot.lane.b32.xlu1 %v136_v20, %s2444_s2 }
 0x238   :  { %v139_v21 = vpop.permute.xlu1 %138 }
 0x239   :  { %v141_v22 = vmul.f32 %v2348_v14, %v139_v21 }
 0x23b   :  { %143 = vrot.lane.b32.xlu1 %v141_v22, %s2445_s21 }
 0x2ad   :  { %v144_v23 = vpop.permute.xlu1 %143 }
 0x2ae   :  { %v146_v24 = vadd.f32 %v2350_v19, %v144_v23 }
 0x2b0   :  { %148 = vrot.lane.b32.xlu0 %v146_v24, %s2443_s18 }
 0x322   :  { %v149_v25 = vpop.permute.xlu0 %148 }
 0x323   :  { %151 = vst.msk [vmem:[#allocation2] sm:$0xff] %vm44_vm1, %v149_v25  ;;  %2153 = vmatmul.mubr.msk.f32.vlgmr.msra.gmra.mxu1 %vm44_vm1, %v149_v25 }
 0x324   :  { %2167 = vmatpush3.msra.mxu1 %v2500_v1  ;;  %2174 = vmatprep.mubr.msk.f32.mxu1 %vm2442_vm0, %v2441_v0 }
 0x325   :  { %2168 = vmatprep.subr.mxu1 %v2441_v0 }
 0x326   :  { %2169 = vmatpush3.msra.mxu1 %v2505_v2 }
 0x327   :  { %2170 = vmatprep.subr.mxu1 %v2441_v0 }
 0x328   :  { %2171 = vmatpush3.msra.mxu1 %v2515_v3 }
 0x329   :  { %2172 = vmatprep.subr.mxu1 %v2441_v0 }
 0x32a   :  { %2173 = vmatpush3.msra.mxu1 %v2524_v4 }
 0x32b   :  { %2188 = vmatprep.subr.mxu1 %v2441_v0 }
 0x3e3   :  { %v222_v26 = vpop.f32.mrf.mxu1 }
 0x3e4   :  { %v223_v27 = vadd.f32 %v2552_v5, %v222_v26 }
 0x3e5   :  { %v2154_v28 = vpop.f32.mrf.mxu1 }
 0x3e6   :  { %234 = vrot.lane.b32.xlu1 %v223_v27, %s2443_s18  ;;  %v226_v30 = vadd.f32 %v1988_v29, %v223_v27 }
 0x3e8   :  { %v1990_v31 = vmul.f32 -1.442695, %v226_v30 }
 0x3ea   :  { %2351 = vpow2.f32 %v1990_v31  ;;  %v1997_v31 = vld [vmem:[%s2929_s0 + $0x20] sm:$0xff] }
 0x3f7   :  { %v2352_v32 = vpop.eup %2351 }
 0x3f8   :  { %v230_v33 = vadd.f32 1.0, %v2352_v32 }
 0x3fa   :  { %2353 = vrcp.f32 %v230_v33 }
 0x407   :  { %v2354_v34 = vpop.eup %2353 }
 0x458   :  { %v235_v35 = vpop.permute.xlu1 %234 }
 0x459   :  { %v237_v36 = vmul.f32 %v2354_v34, %v235_v35 }
 0x45b   :  { %239 = vrot.lane.b32.xlu0 %v237_v36, %s2443_s18 }
 0x4cd   :  { %v240_v37 = vpop.permute.xlu0 %239 }
 0x4ce   :  { %v242_v38 = vadd.f32 %v1988_v29, %v240_v37 }
 0x4d0   :  { %2355 = vtanh.f32 %v242_v38 }
 0x4dd   :  { %v2356_v39 = vpop.eup %2355 }
 0x4de   :  { %v244_v40 = vsub.f32 %v146_v24, %v2356_v39 }
 0x4e0   :  { %246 = vrot.lane.b32.xlu1 %v244_v40, %s2444_s2 }
 0x552   :  { %v247_v41 = vpop.permute.xlu1 %246 }
 0x553   :  { %v249_v42 = vmul.f32 %v2354_v34, %v247_v41 }
 0x555   :  { %251 = vrot.lane.b32.xlu0 %v249_v42, %s2445_s21 }
 0x5c7   :  { %v252_v43 = vpop.permute.xlu0 %251 }
 0x5c8   :  { %v254_v44 = vadd.f32 %v2356_v39, %v252_v43 }
 0x5ca   :  { %256 = vrot.lane.b32.xlu1 %v254_v44, %s2443_s18 }
 0x63c   :  { %v257_v45 = vpop.permute.xlu1 %256 }
 0x63d   :  { %259 = vst.msk [vmem:[#allocation2 + $0x8] sm:$0xff] %vm44_vm1, %v257_v45  ;;  %2164 = vmatmul.mubr.msk.f32.vlgmr.msra.gmra.mxu0 %vm44_vm1, %v257_v45 }
 0x63e   :  { %2178 = vmatpush3.msra.mxu0 %v2500_v1  ;;  %2185 = vmatprep.mubr.msk.f32.mxu0 %vm2442_vm0, %v2441_v0 }
 0x63f   :  { %2179 = vmatprep.subr.mxu0 %v2441_v0 }
 0x640   :  { %2180 = vmatpush3.msra.mxu0 %v2505_v2 }
 0x641   :  { %2181 = vmatprep.subr.mxu0 %v2441_v0 }
 0x642   :  { %2182 = vmatpush3.msra.mxu0 %v2515_v3 }
 0x643   :  { %2183 = vmatprep.subr.mxu0 %v2441_v0 }
 0x644   :  { %2184 = vmatpush3.msra.mxu0 %v2524_v4 }
 0x645   :  { %2199 = vmatprep.subr.mxu0 %v2441_v0 }
 0x6fd   :  { %v330_v46 = vpop.f32.mrf.mxu0 }
 0x6fe   :  { %v331_v47 = vadd.f32 %v2552_v5, %v330_v46 }
 0x6ff   :  { %v2165_v48 = vpop.f32.mrf.mxu0 }
 0x700   :  { %342 = vrot.lane.b32.xlu0 %v331_v47, %s2443_s18  ;;  %v334_v50 = vadd.f32 %v1991_v49, %v331_v47 }
 0x702   :  { %v1993_v51 = vmul.f32 -1.442695, %v334_v50 }
 0x704   :  { %2357 = vpow2.f32 %v1993_v51 }
 0x711   :  { %v2358_v52 = vpop.eup %2357 }
 0x712   :  { %v338_v53 = vadd.f32 1.0, %v2358_v52 }
 0x714   :  { %2359 = vrcp.f32 %v338_v53 }
 0x721   :  { %v2360_v54 = vpop.eup %2359 }
 0x772   :  { %v343_v55 = vpop.permute.xlu0 %342 }
 0x773   :  { %v345_v56 = vmul.f32 %v2360_v54, %v343_v55 }
 0x775   :  { %347 = vrot.lane.b32.xlu1 %v345_v56, %s2443_s18 }
 0x7e7   :  { %v348_v57 = vpop.permute.xlu1 %347 }
 0x7e8   :  { %v350_v58 = vadd.f32 %v1991_v49, %v348_v57 }
 0x7ea   :  { %2361 = vtanh.f32 %v350_v58 }
 0x7f7   :  { %v2362_v59 = vpop.eup %2361 }
 0x7f8   :  { %v352_v60 = vsub.f32 %v254_v44, %v2362_v59 }
 0x7fa   :  { %354 = vrot.lane.b32.xlu0 %v352_v60, %s2444_s2 }
 0x86c   :  { %v355_v61 = vpop.permute.xlu0 %354 }
 0x86d   :  { %v357_v62 = vmul.f32 %v2360_v54, %v355_v61 }
 0x86f   :  { %359 = vrot.lane.b32.xlu1 %v357_v62, %s2445_s21 }
 0x8e1   :  { %v360_v63 = vpop.permute.xlu1 %359 }
 0x8e2   :  { %v362_v6 = vadd.f32 %v2362_v59, %v360_v63  ;;  %v911_v59 = vld [vmem:[%s2930_s3 + $0x18] sm:$0xff] }
 0x8e4   :  { %364 = vrot.lane.b32.xlu0 %v362_v6, %s2443_s18 }
 0x956   :  { %v365_v7 = vpop.permute.xlu0 %364 }
 0x957   :  { %367 = vst.msk [vmem:[#allocation2 + $0x10] sm:$0xff] %vm44_vm1, %v365_v7  ;;  %2175 = vmatmul.mubr.msk.f32.vlgmr.msra.gmra.mxu1 %vm44_vm1, %v365_v7  ;;  %v910_v7 = vld [vmem:[%s2930_s3 + $0x10] sm:$0xff] }
 0x958   :  { %2189 = vmatpush3.msra.mxu1 %v2500_v1  ;;  %2196 = vmatprep.mubr.msk.f32.mxu1 %vm2442_vm0, %v2441_v0 }
 0x959   :  { %2190 = vmatprep.subr.mxu1 %v2441_v0 }
 0x95a   :  { %2191 = vmatpush3.msra.mxu1 %v2505_v2 }
 0x95b   :  { %2192 = vmatprep.subr.mxu1 %v2441_v0 }
 0x95c   :  { %2193 = vmatpush3.msra.mxu1 %v2515_v3 }
 0x95d   :  { %2194 = vmatprep.subr.mxu1 %v2441_v0 }
 0x95e   :  { %2195 = vmatpush3.msra.mxu1 %v2524_v4 }
 0x95f   :  { %2210 = vmatprep.subr.mxu1 %v2441_v0 }
 0xa17   :  { %v438_v8 = vpop.f32.mrf.mxu1 }
 0xa18   :  { %v439_v9 = vadd.f32 %v2552_v5, %v438_v8  ;;  %v918_v8 = vld [vmem:[#allocation2] sm:$0xff] }
 0xa19   :  { %v2176_v10 = vpop.f32.mrf.mxu1 }
 0xa1a   :  { %450 = vrot.lane.b32.xlu1 %v439_v9, %s2443_s18  ;;  %v442_v12 = vadd.f32 %v1994_v11, %v439_v9  ;;  %v909_v9 = vld [vmem:[%s2930_s3 + $0x8] sm:$0xff]  ;;  %v908_v10 = vld [vmem:[%s2930_s3] sm:$0xff] }
 0xa1c   :  { %v1996_v13 = vmul.f32 -1.442695, %v442_v12  ;;  %v920_v12 = vld [vmem:[#allocation2 + $0x10] sm:$0xff] }
 0xa1e   :  { %2363 = vpow2.f32 %v1996_v13 }
 0xa2b   :  { %v2364_v14 = vpop.eup %2363 }
 0xa2c   :  { %v446_v15 = vadd.f32 1.0, %v2364_v14 }
 0xa2e   :  { %2365 = vrcp.f32 %v446_v15 }
 0xa3b   :  { %v2366_v16 = vpop.eup %2365 }
 0xa8c   :  { %v451_v17 = vpop.permute.xlu1 %450 }
 0xa8d   :  { %v453_v18 = vmul.f32 %v2366_v16, %v451_v17 }
 0xa8f   :  { %455 = vrot.lane.b32.xlu0 %v453_v18, %s2443_s18 }
 0xb01   :  { %v456_v19 = vpop.permute.xlu0 %455 }
 0xb02   :  { %v458_v20 = vadd.f32 %v1994_v11, %v456_v19  ;;  %v919_v11 = vld [vmem:[#allocation2 + $0x8] sm:$0xff]  ;;  %v2003_v19 = vld [vmem:[%s2929_s0 + $0x30] sm:$0xff] }
 0xb04   :  { %2367 = vtanh.f32 %v458_v20 }
 0xb11   :  { %v2368_v21 = vpop.eup %2367 }
 0xb12   :  { %v460_v22 = vsub.f32 %v362_v6, %v2368_v21 }
 0xb14   :  { %462 = vrot.lane.b32.xlu1 %v460_v22, %s2444_s2 }
 0xb86   :  { %v463_v23 = vpop.permute.xlu1 %462 }
 0xb87   :  { %v465_v24 = vmul.f32 %v2366_v16, %v463_v23 }
 0xb89   :  { %467 = vrot.lane.b32.xlu0 %v465_v24, %s2445_s21 }
 0xbfb   :  { %v468_v25 = vpop.permute.xlu0 %467 }
 0xbfc   :  { %v470_v26 = vadd.f32 %v2368_v21, %v468_v25 }
 0xbfe   :  { %472 = vrot.lane.b32.xlu1 %v470_v26, %s2443_s18 }
 0xc70   :  { %v473_v27 = vpop.permute.xlu1 %472 }
 0xc71   :  { %475 = vst.msk [vmem:[#allocation2 + $0x18] sm:$0xff] %vm44_vm1, %v473_v27  ;;  %2186 = vmatmul.mubr.msk.f32.vlgmr.msra.gmra.mxu0 %vm44_vm1, %v473_v27 }
 0xc72   :  { %2200 = vmatpush3.msra.mxu0 %v2500_v1  ;;  %2207 = vmatprep.mubr.msk.f32.mxu0 %vm2442_vm0, %v2441_v0 }
 0xc73   :  { %2201 = vmatprep.subr.mxu0 %v2441_v0 }
 0xc74   :  { %2202 = vmatpush3.msra.mxu0 %v2505_v2 }
 0xc75   :  { %2203 = vmatprep.subr.mxu0 %v2441_v0 }
 0xc76   :  { %2204 = vmatpush3.msra.mxu0 %v2515_v3 }
 0xc77   :  { %2205 = vmatprep.subr.mxu0 %v2441_v0 }
 0xc78   :  { %2206 = vmatpush3.msra.mxu0 %v2524_v4  ;;  %v921_v13 = vld [vmem:[#allocation2 + $0x18] sm:$0xff] }
 0xc79   :  { %2221 = vmatprep.subr.mxu0 %v911_v59 }
 0xd31   :  { %v546_v28 = vpop.f32.mrf.mxu0 }
 0xd32   :  { %v547_v29 = vadd.f32 %v2552_v5, %v546_v28 }
 0xd33   :  { %v2187_v30 = vpop.f32.mrf.mxu0 }
 0xd34   :  { %558 = vrot.lane.b32.xlu0 %v547_v29, %s2443_s18  ;;  %v550_v32 = vadd.f32 %v1997_v31, %v547_v29 }
 0xd36   :  { %v1999_v33 = vmul.f32 -1.442695, %v550_v32 }
 0xd38   :  { %2369 = vpow2.f32 %v1999_v33  ;;  %v2699_v33 = vld [vmem:[%s2931_s5 + $0x18] sm:$0xff] }
 0xd45   :  { %v2370_v34 = vpop.eup %2369 }
 0xd46   :  { %v554_v35 = vadd.f32 1.0, %v2370_v34  ;;  %v2705_v34 = vld [vmem:[%s2931_s5 + $0x10] sm:$0xff] }
 0xd48   :  { %2371 = vrcp.f32 %v554_v35  ;;  %v2712_v35 = vld [vmem:[%s2931_s5 + $0x8] sm:$0xff] }
 0xd55   :  { %v2372_v36 = vpop.eup %2371 }
 0xda6   :  { %v559_v37 = vpop.permute.xlu0 %558 }
 0xda7   :  { %v561_v38 = vmul.f32 %v2372_v36, %v559_v37 }
 0xda9   :  { %563 = vrot.lane.b32.xlu1 %v561_v38, %s2443_s18 }
 0xe1b   :  { %v564_v39 = vpop.permute.xlu1 %563 }
 0xe1c   :  { %v566_v40 = vadd.f32 %v1997_v31, %v564_v39 }
 0xe1e   :  { %2373 = vtanh.f32 %v566_v40 }
 0xe2b   :  { %v2374_v41 = vpop.eup %2373 }
 0xe2c   :  { %v568_v42 = vsub.f32 %v470_v26, %v2374_v41 }
 0xe2e   :  { %570 = vrot.lane.b32.xlu0 %v568_v42, %s2444_s2 }
 0xea0   :  { %v571_v43 = vpop.permute.xlu0 %570 }
 0xea1   :  { %v573_v44 = vmul.f32 %v2372_v36, %v571_v43  ;;  %v2719_v36 = vld [vmem:[%s2931_s5] sm:$0xff] }
 0xea2   :  { %v2755_v43 = vld [vmem:[%s2932_s6] ss:$0 sm:$0xff] }
 0xea3   :  { %575 = vrot.lane.b32.xlu1 %v573_v44, %s2445_s21 }
 0xf15   :  { %v576_v45 = vpop.permute.xlu1 %575 }
 0xf16   :  { %v578_v46 = vadd.f32 %v2374_v41, %v576_v45 }
 0xf18   :  { %580 = vrot.lane.b32.xlu0 %v578_v46, %s2443_s18 }
 0xf8a   :  { %v581_v47 = vpop.permute.xlu0 %580 }
 0xf8b   :  { %583 = vst.msk [vmem:[#allocation2 + $0x20] sm:$0xff] %vm44_vm1, %v581_v47  ;;  %2197 = vmatmul.mubr.msk.f32.vlgmr.msra.gmra.mxu1 %vm44_vm1, %v581_v47 }
 0xf8c   :  { %2211 = vmatpush3.msra.mxu1 %v2500_v1  ;;  %2218 = vmatprep.mubr.msk.f32.mxu1 %vm2442_vm0, %v2441_v0 }
 0xf8d   :  { %2212 = vmatprep.subr.mxu1 %v2441_v0 }
 0xf8e   :  { %2213 = vmatpush3.msra.mxu1 %v2505_v2  ;;  %v2000_v2 = vld [vmem:[%s2929_s0 + $0x28] sm:$0xff] }
 0xf8f   :  { %2214 = vmatprep.subr.mxu1 %v2441_v0 }
 0xf90   :  { %2215 = vmatpush3.msra.mxu1 %v2515_v3 }
 0xf91   :  { %2216 = vmatprep.subr.mxu1 %v2441_v0 }
 0xf92   :  { %2217 = vmatpush3.msra.mxu1 %v2524_v4  ;;  %v922_v14 = vld [vmem:[#allocation2 + $0x20] sm:$0xff] }
 0xf93   :  { %2241 = vmatprep.subr.mxu1 %v2441_v0 }
0x104b   :  { %v654_v48 = vpop.f32.mrf.mxu1 }
0x104c   :  { %v655_v1 = vadd.f32 %v2552_v5, %v654_v48 }
0x104d   :  { %v2198_v49 = vpop.f32.mrf.mxu1 }
0x104e   :  { %666 = vrot.lane.b32.xlu1 %v655_v1, %s2443_s18  ;;  %v658_v50 = vadd.f32 %v2000_v2, %v655_v1  ;;  %v2764_v1 = vld [vmem:[%s2933_s4] ss:$0 sm:$0xff] }
0x1050   :  { %v2002_v51 = vmul.f32 -1.442695, %v658_v50 }
0x1052   :  { %2375 = vpow2.f32 %v2002_v51 }
0x105f   :  { %v2376_v3 = vpop.eup %2375 }
0x1060   :  { %v662_v52 = vadd.f32 1.0, %v2376_v3 }
0x1062   :  { %2377 = vrcp.f32 %v662_v52 }
0x106f   :  { %v2378_v53 = vpop.eup %2377 }
0x10c0   :  { %v667_v4 = vpop.permute.xlu1 %666 }
0x10c1   :  { %v669_v54 = vmul.f32 %v2378_v53, %v667_v4 }
0x10c3   :  { %671 = vrot.lane.b32.xlu0 %v669_v54, %s2443_s18 }
0x1135   :  { %v672_v55 = vpop.permute.xlu0 %671 }
0x1136   :  { %v674_v56 = vadd.f32 %v2000_v2, %v672_v55 }
0x1138   :  { %2379 = vtanh.f32 %v674_v56 }
0x1145   :  { %v2380_v57 = vpop.eup %2379 }
0x1146   :  { %v676_v58 = vsub.f32 %v578_v46, %v2380_v57 }
0x1148   :  { %678 = vrot.lane.b32.xlu1 %v676_v58, %s2444_s2 }
0x11ba   :  { %v679_v60 = vpop.permute.xlu1 %678 }
0x11bb   :  { %v681_v61 = vmul.f32 %v2378_v53, %v679_v60 }
0x11bd   :  { %683 = vrot.lane.b32.xlu0 %v681_v61, %s2445_s21  ;;  %v2006_v61 = vld [vmem:[%s2929_s0 + $0x38] sm:$0xff] }
0x122f   :  { %v684_v62 = vpop.permute.xlu0 %683 }
0x1230   :  { %v686_v63 = vadd.f32 %v2380_v57, %v684_v62 }
0x1232   :  { %688 = vrot.lane.b32.xlu1 %v686_v63, %s2443_s18 }
0x12a4   :  { %v689_v6 = vpop.permute.xlu1 %688 }
0x12a5   :  { %691 = vst.msk [vmem:[#allocation2 + $0x28] sm:$0xff] %vm44_vm1, %v689_v6  ;;  %2208 = vmatmul.mubr.msk.f32.vlgmr.msra.gmra.mxu0 %vm44_vm1, %v689_v6 }
0x12a6   :  { %2222 = vmatpush3.msra.mxu0 %v911_v59  ;;  %2229 = vmatprep.mubr.msk.f32.mxu0 %vm44_vm1, %v918_v8 }
0x12a7   :  { %2223 = vmatprep.subr.mxu0 %v910_v7 }
0x12a8   :  { %2224 = vmatpush3.msra.mxu0 %v910_v7 }
0x12a9   :  { %2225 = vmatprep.subr.mxu0 %v909_v9 }
0x12aa   :  { %2226 = vmatpush3.msra.mxu0 %v909_v9 }
0x12ab   :  { %2227 = vmatprep.subr.mxu0 %v908_v10 }
0x12ac   :  { %2228 = vmatpush3.msra.mxu0 %v908_v10  ;;  %v923_v15 = vld [vmem:[#allocation2 + $0x28] sm:$0xff] }
0x12ad   :  { %2230 = vmatmul.mubr.msk.f32.vlgmr.msra.gmra.mxu0 %vm44_vm1, %v919_v11  ;;  %2263 = vmatprep.subr.mxu0 %v2441_v0 }
0x12ae   :  { %2232 = vmatprep.mubr.msk.f32.mxu0 %vm44_vm1, %v920_v12  ;;  %2264 = vmatpush3.msra.mxu0 %v2699_v33 }
0x12af   :  { %2265 = vmatprep.subr.mxu0 %v2441_v0 }
0x12b0   :  { %2266 = vmatpush3.msra.mxu0 %v2705_v34 }
0x12b1   :  { %2233 = vmatmul.mubr.msk.f32.gmra.mxu0 %vm44_vm1, %v921_v13  ;;  %2267 = vmatprep.subr.mxu0 %v2441_v0 }
0x12b2   :  { %2235 = vmatprep.mubr.msk.f32.mxu0 %vm44_vm1, %v922_v14  ;;  %2268 = vmatpush3.msra.mxu0 %v2712_v35 }
0x12b3   :  { %2269 = vmatprep.subr.mxu0 %v2441_v0 }
0x12b4   :  { %2270 = vmatpush3.msra.mxu0 %v2719_v36 }
0x12b5   :  { %2236 = vmatmul.mubr.msk.f32.gmra.mxu0 %vm44_vm1, %v923_v15  ;;  %2285 = vmatprep.subr.mxu0 %v2441_v0 }
0x1365   :  { %v762_v16 = vpop.f32.mrf.mxu0 }
0x1366   :  { %v763_v17 = vadd.f32 %v2552_v5, %v762_v16 }
0x1367   :  { %v2209_v18 = vpop.f32.mrf.mxu0 }
0x1368   :  { %774 = vrot.lane.b32.xlu0 %v763_v17, %s2443_s18  ;;  %v766_v20 = vadd.f32 %v2003_v19, %v763_v17 }
0x136a   :  { %v2005_v21 = vmul.f32 -1.442695, %v766_v20 }
0x136c   :  { %2381 = vpow2.f32 %v2005_v21 }
0x136d   :  { %v2759_v47 = vpop.f32.mrf.mxu0 }
0x136f   :  { %v1022_v48 = vpop.f32.mrf.mxu0 }
0x1370   :  { %v1023_v49 = vadd.f32 %v2764_v1, %v1022_v48 }
0x1371   :  { %v2234_v48 = vpop.f32.mrf.mxu0 }
0x1379   :  { %v2382_v22 = vpop.eup %2381 }
0x137a   :  { %v770_v23 = vadd.f32 1.0, %v2382_v22 }
0x137c   :  { %2383 = vrcp.f32 %v770_v23 }
0x1389   :  { %v2384_v24 = vpop.eup %2383 }
0x13da   :  { %v775_v25 = vpop.permute.xlu0 %774 }
0x13db   :  { %v777_v26 = vmul.f32 %v2384_v24, %v775_v25 }
0x13dd   :  { %779 = vrot.lane.b32.xlu1 %v777_v26, %s2443_s18 }
0x144f   :  { %v780_v27 = vpop.permute.xlu1 %779 }
0x1450   :  { %v782_v28 = vadd.f32 %v2003_v19, %v780_v27 }
0x1452   :  { %2385 = vtanh.f32 %v782_v28 }
0x145f   :  { %v2386_v29 = vpop.eup %2385 }
0x1460   :  { %v784_v30 = vsub.f32 %v686_v63, %v2386_v29 }
0x1462   :  { %786 = vrot.lane.b32.xlu0 %v784_v30, %s2444_s2 }
0x14d4   :  { %v787_v31 = vpop.permute.xlu0 %786 }
0x14d5   :  { %v789_v32 = vmul.f32 %v2384_v24, %v787_v31  ;;  %v1028_v24 = vadd.f32 %v2759_v47, %v2764_v1 }
0x14d7   :  { %791 = vrot.lane.b32.xlu1 %v789_v32, %s2445_s21 }
0x1549   :  { %v792_v37 = vpop.permute.xlu1 %791 }
0x154a   :  { %v2724_v38 = vadd.f32 %v2386_v29, %v792_v37 }
0x154c   :  { %796 = vrot.lane.b32.xlu0 %v2724_v38, %s2443_s18 }
0x15be   :  { %v797_v39 = vpop.permute.xlu0 %796 }
0x15bf   :  { %799 = vst.msk [vmem:[#allocation2 + $0x30] sm:$0xff] %vm44_vm1, %v797_v39  ;;  %2219 = vmatmul.mubr.msk.f32.vlgmr.msra.gmra.mxu1 %vm44_vm1, %v797_v39 }
0x15c0   :  { %2242 = vmatpush3.msra.mxu1 %v2699_v33  ;;  %2249 = vmatprep.mubr.msk.f32.mxu1 %vm2442_vm0, %v2441_v0 }
0x15c1   :  { %2243 = vmatprep.subr.mxu1 %v2441_v0 }
0x15c2   :  { %2244 = vmatpush3.msra.mxu1 %v2705_v34 }
0x15c3   :  { %2245 = vmatprep.subr.mxu1 %v2441_v0 }
0x15c4   :  { %2246 = vmatpush3.msra.mxu1 %v2712_v35 }
0x15c5   :  { %2247 = vmatprep.subr.mxu1 %v2441_v0 }
0x15c6   :  { %2248 = vmatpush3.msra.mxu1 %v2719_v36  ;;  %v924_v40 = vld [vmem:[#allocation2 + $0x30] sm:$0xff] }
0x15c7   :  { %2250 = vmatmul.mubr.f32.vlgmr.msra.gmra.mxu1 %v2441_v0  ;;  %2238 = vmatprep.mubr.msk.f32.mxu0 %vm44_vm1, %v924_v40 }
0x15c8   :  { %2252 = vmatprep.subr.mxu1 %v2441_v0  ;;  %2260 = vmatprep.mubr.msk.f32.mxu1 %vm2442_vm0, %v2441_v0 }
0x15c9   :  { %2253 = vmatpush3.msra.mxu1 %v2699_v33 }
0x15ca   :  { %2254 = vmatprep.subr.mxu1 %v2441_v0 }
0x15cb   :  { %2255 = vmatpush3.msra.mxu1 %v2705_v34 }
0x15cc   :  { %2256 = vmatprep.subr.mxu1 %v2441_v0 }
0x15cd   :  { %2257 = vmatpush3.msra.mxu1 %v2712_v35 }
0x15ce   :  { %2258 = vmatprep.subr.mxu1 %v2441_v0 }
0x15cf   :  { %2259 = vmatpush3.msra.mxu1 %v2719_v36 }
0x15d0   :  { %2274 = vmatprep.subr.mxu1 %v2441_v0 }
0x167f   :  { %v870_v41 = vpop.f32.mrf.mxu1 }
0x1680   :  { %v871_v60 = vadd.f32 %v2552_v5, %v870_v41 }
0x1681   :  { %v2220_v42 = vpop.f32.mrf.mxu1 }
0x1682   :  { %v874_v62 = vadd.f32 %v2006_v61, %v871_v60 }
0x1684   :  { %v2008_v63 = vmul.f32 -1.442695, %v874_v62 }
0x1687   :  { %v1133_v44 = vpop.f32.mrf.mxu1 }
0x1688   :  { %v1134_v45 = vadd.f32 %v2755_v43, %v1133_v44 }
0x1689   :  { %v2251_v46 = vpop.f32.mrf.mxu1 }
0x168a   :  { %1145 = vrot.lane.b32.xlu1 %v1134_v45, %s2443_s18  ;;  %v1137_v2 = vadd.f32 %v1134_v45, %v1023_v49 }
0x168c   :  { %v2019_v50 = vmul.f32 -1.442695, %v1137_v2 }
0x168e   :  { %2387 = vpow2.f32 %v2019_v50 }
0x169b   :  { %v2388_v51 = vpop.eup %2387 }
0x169c   :  { %v1141_v3 = vadd.f32 1.0, %v2388_v51 }
0x169e   :  { %2389 = vrcp.f32 %v1141_v3 }
0x16ab   :  { %v2390_v52 = vpop.eup %2389 }
0x16fc   :  { %v1146_v53 = vpop.permute.xlu1 %1145 }
0x16fd   :  { %v1148_v4 = vmul.f32 %v2390_v52, %v1146_v53 }
0x16ff   :  { %1150 = vrot.lane.b32.xlu0 %v1148_v4, %s2443_s18 }
0x1771   :  { %v1151_v54 = vpop.permute.xlu0 %1150 }
0x1772   :  { %v1153_v55 = vadd.f32 %v1151_v54, %v1023_v49  ;;  %v1032_v49 = vpop.f32.mrf.mxu0 }
0x1773   :  { %v1033_v54 = vadd.f32 %v2764_v1, %v1032_v49 }
0x1774   :  { %2391 = vtanh.f32 %v1153_v55  ;;  %v2815_v2 = vpop.f32.mrf.mxu0 }
0x1775   :  { %2393 = vpow2.f32 %v2008_v63 }
0x1776   :  { %v2817_v50 = vpop.f32.mrf.mxu0 }
0x1781   :  { %v2392_v56 = vpop.eup %2391 }
0x1782   :  { %v1155_v57 = vsub.f32 0.0, %v2392_v56  ;;  %v2394_v6 = vpop.eup %2393 }
0x1783   :  { %v878_v7 = vadd.f32 1.0, %v2394_v6 }
0x1784   :  { %1157 = vrot.lane.b32.xlu1 %v1155_v57, %s2444_s2 }
0x1785   :  { %2395 = vrcp.f32 %v878_v7 }
0x1792   :  { %v2396_v10 = vpop.eup %2395 }
0x17f6   :  { %v1158_v58 = vpop.permute.xlu1 %1157 }
0x17f7   :  { %v1160_v59 = vmul.f32 %v2390_v52, %v1158_v58 }
0x17f9   :  { %1162 = vrot.lane.b32.xlu0 %v1160_v59, %s2445_s21 }
0x17fd   :  { %882 = vrot.lane.b32.xlu0 %v871_v60, %s2443_s18 }
0x186b   :  { %v1163_v8 = vpop.permute.xlu0 %1162 }
0x186c   :  { %v1165_v9 = vadd.f32 %v2392_v56, %v1163_v8 }
0x186e   :  { %1167 = vrot.lane.b32.xlu1 %v1165_v9, %s2443_s18 }
0x186f   :  { %v883_v11 = vpop.permute.xlu0 %882 }
0x1870   :  { %v885_v12 = vmul.f32 %v2396_v10, %v883_v11 }
0x1872   :  { %887 = vrot.lane.b32.xlu0 %v885_v12, %s2443_s18 }
0x18e0   :  { %v1168_v5 = vpop.permute.xlu1 %1167 }
0x18e1   :  { %2261 = vmatmul.mubr.msk.f32.vlgmr.msra.gmra.mxu1 %vm44_vm1, %v1168_v5 }
0x18e2   :  { %2275 = vmatpush3.msra.mxu1 %v2699_v33  ;;  %2282 = vmatprep.mubr.msk.f32.mxu1 %vm2442_vm0, %v2441_v0 }
0x18e3   :  { %2276 = vmatprep.subr.mxu1 %v2441_v0 }
0x18e4   :  { %v888_v13 = vpop.permute.xlu0 %887  ;;  %2277 = vmatpush3.msra.mxu1 %v2705_v34 }
0x18e5   :  { %v890_v14 = vadd.f32 %v2006_v61, %v888_v13  ;;  %2278 = vmatprep.subr.mxu1 %v2441_v0 }
0x18e6   :  { %2279 = vmatpush3.msra.mxu1 %v2712_v35 }
0x18e7   :  { %2397 = vtanh.f32 %v890_v14  ;;  %2280 = vmatprep.subr.mxu1 %v2441_v0 }
0x18e8   :  { %2281 = vmatpush3.msra.mxu1 %v2719_v36 }
0x18e9   :  { %2296 = vmatprep.subr.mxu1 %v2441_v0 }
0x18f4   :  { %v2398_v15 = vpop.eup %2397 }
0x18f5   :  { %v892_v16 = vsub.f32 %v2724_v38, %v2398_v15 }
0x18f7   :  { %894 = vrot.lane.b32.xlu0 %v892_v16, %s2444_s2 }
0x1969   :  { %v895_v17 = vpop.permute.xlu0 %894 }
0x196a   :  { %v897_v18 = vmul.f32 %v2396_v10, %v895_v17 }
0x196c   :  { %899 = vrot.lane.b32.xlu0 %v897_v18, %s2445_s21 }
0x19a1   :  { %v1237_v19 = vpop.f32.mrf.mxu1 }
0x19a2   :  { %v1238_v20 = vadd.f32 %v2755_v43, %v1237_v19 }
0x19a3   :  { %v2262_v21 = vpop.f32.mrf.mxu1 }
0x19a4   :  { %1249 = vrot.lane.b32.xlu1 %v1238_v20, %s2443_s18  ;;  %v1241_v25 = vadd.f32 %v1238_v20, %v1028_v24 }
0x19a6   :  { %v2021_v26 = vmul.f32 -1.442695, %v1241_v25 }
0x19a8   :  { %2399 = vpow2.f32 %v2021_v26 }
0x19b5   :  { %v2400_v27 = vpop.eup %2399 }
0x19b6   :  { %v1245_v28 = vadd.f32 1.0, %v2400_v27 }
0x19b8   :  { %2401 = vrcp.f32 %v1245_v28 }
0x19c5   :  { %v2402_v29 = vpop.eup %2401 }
0x19de   :  { %v900_v22 = vpop.permute.xlu0 %899 }
0x19df   :  { %v902_v23 = vadd.f32 %v2398_v15, %v900_v22  ;;  %v1038_v15 = vadd.f32 %v2234_v48, %v2764_v1 }
0x19e1   :  { %904 = vrot.lane.b32.xlu0 %v902_v23, %s2443_s18 }
0x1a16   :  { %v1250_v30 = vpop.permute.xlu1 %1249 }
0x1a17   :  { %v1252_v31 = vmul.f32 %v2402_v29, %v1250_v30 }
0x1a19   :  { %1254 = vrot.lane.b32.xlu1 %v1252_v31, %s2443_s18 }
0x1a53   :  { %v905_v32 = vpop.permute.xlu0 %904 }
0x1a54   :  { %907 = vst.msk [vmem:[#allocation2 + $0x38] sm:$0xff] %vm44_vm1, %v905_v32 }
0x1a5b   :  { %v925_v37 = vld [vmem:[#allocation2 + $0x38] sm:$0xff] }
0x1a5c   :  { %2239 = vmatmul.mubr.msk.f32.gmra.mxu0 %vm44_vm1, %v925_v37 }
0x1a5d   :  { %2271 = vmatprep.mubr.msk.f32.mxu0 %vm2442_vm0, %v2441_v0 }
0x1a8b   :  { %v1255_v38 = vpop.permute.xlu1 %1254 }
0x1a8c   :  { %v1257_v39 = vadd.f32 %v1255_v38, %v1028_v24 }
0x1a8e   :  { %2403 = vtanh.f32 %v1257_v39  ;;  %v1043_v39 = vadd.f32 %v2764_v1, %v2817_v50 }
0x1a9b   :  { %v2404_v40 = vpop.eup %2403 }
0x1a9c   :  { %v1259_v41 = vsub.f32 %v1165_v9, %v2404_v40 }
0x1a9e   :  { %1261 = vrot.lane.b32.xlu1 %v1259_v41, %s2444_s2 }
0x1b10   :  { %v1262_v42 = vpop.permute.xlu1 %1261 }
0x1b11   :  { %v1264_v44 = vmul.f32 %v2402_v29, %v1262_v42 }
0x1b13   :  { %1266 = vrot.lane.b32.xlu1 %v1264_v44, %s2445_s21 }
0x1b1c   :  { %v2819_v51 = vpop.f32.mrf.mxu0 }
0x1b1e   :  { %v2821_v3 = vpop.f32.mrf.mxu0 }
0x1b85   :  { %v1267_v45 = vpop.permute.xlu1 %1266 }
0x1b86   :  { %v1269_v46 = vadd.f32 %v2404_v40, %v1267_v45 }
0x1b88   :  { %1271 = vrot.lane.b32.xlu1 %v1269_v46, %s2443_s18 }
0x1bfa   :  { %v1272_v47 = vpop.permute.xlu1 %1271 }
0x1bfb   :  { %2272 = vmatmul.mubr.msk.f32.vlgmr.msra.gmra.mxu0 %vm44_vm1, %v1272_v47 }
0x1bfc   :  { %2286 = vmatpush3.msra.mxu0 %v2699_v33  ;;  %2293 = vmatprep.mubr.msk.f32.mxu0 %vm2442_vm0, %v2441_v0 }
0x1bfd   :  { %2287 = vmatprep.subr.mxu0 %v2441_v0 }
0x1bfe   :  { %2288 = vmatpush3.msra.mxu0 %v2705_v34 }
0x1bff   :  { %2289 = vmatprep.subr.mxu0 %v2441_v0 }
0x1c00   :  { %2290 = vmatpush3.msra.mxu0 %v2712_v35 }
0x1c01   :  { %2291 = vmatprep.subr.mxu0 %v2441_v0 }
0x1c02   :  { %2292 = vmatpush3.msra.mxu0 %v2719_v36 }
0x1c03   :  { %2307 = vmatprep.subr.mxu0 %v2441_v0 }
0x1cbb   :  { %v1341_v52 = vpop.f32.mrf.mxu0 }
0x1cbc   :  { %v1342_v53 = vadd.f32 %v2755_v43, %v1341_v52 }
0x1cbd   :  { %v2273_v4 = vpop.f32.mrf.mxu0 }
0x1cbe   :  { %1353 = vrot.lane.b32.xlu0 %v1342_v53, %s2443_s18  ;;  %v1345_v55 = vadd.f32 %v1342_v53, %v1033_v54 }
0x1cc0   :  { %v2023_v56 = vmul.f32 -1.442695, %v1345_v55 }
0x1cc2   :  { %2405 = vpow2.f32 %v2023_v56 }
0x1ccf   :  { %v2406_v57 = vpop.eup %2405 }
0x1cd0   :  { %v1349_v58 = vadd.f32 1.0, %v2406_v57 }
0x1cd2   :  { %2407 = vrcp.f32 %v1349_v58 }
0x1cdf   :  { %v2408_v59 = vpop.eup %2407 }
0x1d30   :  { %v1354_v60 = vpop.permute.xlu0 %1353 }
0x1d31   :  { %v1356_v61 = vmul.f32 %v2408_v59, %v1354_v60 }
0x1d33   :  { %1358 = vrot.lane.b32.xlu1 %v1356_v61, %s2443_s18 }
0x1da5   :  { %v1359_v62 = vpop.permute.xlu1 %1358 }
0x1da6   :  { %v1361_v63 = vadd.f32 %v1359_v62, %v1033_v54 }
0x1da8   :  { %2409 = vtanh.f32 %v1361_v63 }
0x1db5   :  { %v2410_v6 = vpop.eup %2409 }
0x1db6   :  { %v1363_v7 = vsub.f32 %v1269_v46, %v2410_v6 }
0x1db8   :  { %1365 = vrot.lane.b32.xlu0 %v1363_v7, %s2444_s2 }
0x1e2a   :  { %v1366_v8 = vpop.permute.xlu0 %1365 }
0x1e2b   :  { %v1368_v9 = vmul.f32 %v2408_v59, %v1366_v8 }
0x1e2d   :  { %1370 = vrot.lane.b32.xlu1 %v1368_v9, %s2445_s21 }
0x1e9f   :  { %v1371_v10 = vpop.permute.xlu1 %1370 }
0x1ea0   :  { %v1373_v11 = vadd.f32 %v2410_v6, %v1371_v10 }
0x1ea2   :  { %1375 = vrot.lane.b32.xlu0 %v1373_v11, %s2443_s18 }
0x1f14   :  { %v1376_v12 = vpop.permute.xlu0 %1375 }
0x1f15   :  { %2283 = vmatmul.mubr.msk.f32.vlgmr.msra.gmra.mxu1 %vm44_vm1, %v1376_v12 }
0x1f16   :  { %2297 = vmatpush3.msra.mxu1 %v2699_v33  ;;  %2304 = vmatprep.mubr.msk.f32.mxu1 %vm2442_vm0, %v2441_v0 }
0x1f17   :  { %2298 = vmatprep.subr.mxu1 %v2441_v0 }
0x1f18   :  { %2299 = vmatpush3.msra.mxu1 %v2705_v34 }
0x1f19   :  { %2300 = vmatprep.subr.mxu1 %v2441_v0 }
0x1f1a   :  { %2301 = vmatpush3.msra.mxu1 %v2712_v35 }
0x1f1b   :  { %2302 = vmatprep.subr.mxu1 %v2441_v0 }
0x1f1c   :  { %2303 = vmatpush3.msra.mxu1 %v2719_v36 }
0x1f1d   :  { %2318 = vmatprep.subr.mxu1 %v2441_v0 }
0x1fd5   :  { %v1445_v5 = vpop.f32.mrf.mxu1 }
0x1fd6   :  { %v1446_v13 = vadd.f32 %v2755_v43, %v1445_v5 }
0x1fd7   :  { %v2284_v14 = vpop.f32.mrf.mxu1 }
0x1fd8   :  { %1457 = vrot.lane.b32.xlu1 %v1446_v13, %s2443_s18  ;;  %v1449_v16 = vadd.f32 %v1446_v13, %v1038_v15 }
0x1fda   :  { %v2025_v17 = vmul.f32 -1.442695, %v1449_v16  ;;  %v1053_v16 = vadd.f32 %v2764_v1, %v2821_v3 }
0x1fdc   :  { %2411 = vpow2.f32 %v2025_v17 }
0x1fe9   :  { %v2412_v18 = vpop.eup %2411 }
0x1fea   :  { %v1453_v19 = vadd.f32 1.0, %v2412_v18 }
0x1fec   :  { %2413 = vrcp.f32 %v1453_v19 }
0x1ff9   :  { %v2414_v20 = vpop.eup %2413 }
0x204a   :  { %v1458_v21 = vpop.permute.xlu1 %1457 }
0x204b   :  { %v1460_v22 = vmul.f32 %v2414_v20, %v1458_v21 }
0x204d   :  { %1462 = vrot.lane.b32.xlu0 %v1460_v22, %s2443_s18 }
0x20bf   :  { %v1463_v23 = vpop.permute.xlu0 %1462 }
0x20c0   :  { %v1465_v24 = vadd.f32 %v1463_v23, %v1038_v15 }
0x20c2   :  { %2415 = vtanh.f32 %v1465_v24 }
0x20cf   :  { %v2416_v25 = vpop.eup %2415 }
0x20d0   :  { %v1467_v26 = vsub.f32 %v1373_v11, %v2416_v25 }
0x20d2   :  { %1469 = vrot.lane.b32.xlu1 %v1467_v26, %s2444_s2 }
0x2144   :  { %v1470_v27 = vpop.permute.xlu1 %1469 }
0x2145   :  { %v1472_v28 = vmul.f32 %v2414_v20, %v1470_v27 }
0x2147   :  { %1474 = vrot.lane.b32.xlu0 %v1472_v28, %s2445_s21 }
0x21b9   :  { %v1475_v29 = vpop.permute.xlu0 %1474 }
0x21ba   :  { %v1477_v30 = vadd.f32 %v2416_v25, %v1475_v29 }
0x21bc   :  { %1479 = vrot.lane.b32.xlu1 %v1477_v30, %s2443_s18 }
0x222e   :  { %v1480_v31 = vpop.permute.xlu1 %1479 }
0x222f   :  { %2294 = vmatmul.mubr.msk.f32.vlgmr.msra.gmra.mxu0 %vm44_vm1, %v1480_v31 }
0x2230   :  { %2308 = vmatpush3.msra.mxu0 %v2699_v33  ;;  %2315 = vmatprep.mubr.msk.f32.mxu0 %vm2442_vm0, %v2441_v0 }
0x2231   :  { %2309 = vmatprep.subr.mxu0 %v2441_v0 }
0x2232   :  { %2310 = vmatpush3.msra.mxu0 %v2705_v34 }
0x2233   :  { %2311 = vmatprep.subr.mxu0 %v2441_v0 }
0x2234   :  { %2312 = vmatpush3.msra.mxu0 %v2712_v35 }
0x2235   :  { %2313 = vmatprep.subr.mxu0 %v2441_v0 }
0x2236   :  { %2314 = vmatpush3.msra.mxu0 %v2719_v36 }
0x2237   :  { %2329 = vmatprep.subr.mxu0 %v2441_v0 }
0x22ef   :  { %v1549_v32 = vpop.f32.mrf.mxu0 }
0x22f0   :  { %v1550_v37 = vadd.f32 %v2755_v43, %v1549_v32 }
0x22f1   :  { %v2295_v38 = vpop.f32.mrf.mxu0 }
0x22f2   :  { %1561 = vrot.lane.b32.xlu0 %v1550_v37, %s2443_s18  ;;  %v1553_v40 = vadd.f32 %v1550_v37, %v1043_v39 }
0x22f4   :  { %v2027_v41 = vmul.f32 -1.442695, %v1553_v40 }
0x22f6   :  { %2417 = vpow2.f32 %v2027_v41 }
0x2303   :  { %v2418_v42 = vpop.eup %2417 }
0x2304   :  { %v1557_v44 = vadd.f32 1.0, %v2418_v42 }
0x2306   :  { %2419 = vrcp.f32 %v1557_v44 }
0x2313   :  { %v2420_v45 = vpop.eup %2419 }
0x2364   :  { %v1562_v46 = vpop.permute.xlu0 %1561 }
0x2365   :  { %v1564_v47 = vmul.f32 %v2420_v45, %v1562_v46 }
0x2367   :  { %1566 = vrot.lane.b32.xlu1 %v1564_v47, %s2443_s18 }
0x23d9   :  { %v1567_v48 = vpop.permute.xlu1 %1566 }
0x23da   :  { %v1569_v49 = vadd.f32 %v1567_v48, %v1043_v39  ;;  %v1058_v39 = vadd.f32 %v2819_v51, %v2764_v1  ;;  %v1896_v51 = vld [vmem:[%s2934_s7 + $0x10] sm:$0xff] }
0x23dc   :  { %2421 = vtanh.f32 %v1569_v49 }
0x23e9   :  { %v2422_v52 = vpop.eup %2421 }
0x23ea   :  { %v1571_v53 = vsub.f32 %v1477_v30, %v2422_v52 }
0x23ec   :  { %1573 = vrot.lane.b32.xlu0 %v1571_v53, %s2444_s2  ;;  %v1895_v53 = vld [vmem:[%s2934_s7 + $0x8] sm:$0xff] }
0x245e   :  { %v1574_v4 = vpop.permute.xlu0 %1573 }
0x245f   :  { %v1576_v50 = vmul.f32 %v2420_v45, %v1574_v4  ;;  %v1894_v4 = vld [vmem:[%s2934_s7] sm:$0xff] }
0x2461   :  { %1578 = vrot.lane.b32.xlu1 %v1576_v50, %s2445_s21 }
0x24d3   :  { %v1579_v54 = vpop.permute.xlu1 %1578 }
0x24d4   :  { %v1581_v55 = vadd.f32 %v2422_v52, %v1579_v54 }
0x24d6   :  { %1583 = vrot.lane.b32.xlu0 %v1581_v55, %s2443_s18 }
0x2548   :  { %v1584_v56 = vpop.permute.xlu0 %1583 }
0x2549   :  { %2305 = vmatmul.mubr.msk.f32.vlgmr.msra.gmra.mxu1 %vm44_vm1, %v1584_v56 }
0x254a   :  { %2319 = vmatpush3.msra.mxu1 %v2699_v33  ;;  %2326 = vmatprep.mubr.msk.f32.mxu1 %vm2442_vm0, %v2441_v0  ;;  %v1048_v33 = vadd.f32 %v2815_v2, %v2764_v1  ;;  %v1897_v1 = vld [vmem:[%s2934_s7 + $0x18] sm:$0xff] }
0x254b   :  { %2320 = vmatprep.subr.mxu1 %v2441_v0 }
0x254c   :  { %2321 = vmatpush3.msra.mxu1 %v2705_v34 }
0x254d   :  { %2322 = vmatprep.subr.mxu1 %v2441_v0 }
0x254e   :  { %2323 = vmatpush3.msra.mxu1 %v2712_v35 }
0x254f   :  { %2324 = vmatprep.subr.mxu1 %v2441_v0 }
0x2550   :  { %2325 = vmatpush3.msra.mxu1 %v2719_v36 }
0x2609   :  { %v1653_v57 = vpop.f32.mrf.mxu1 }
0x260a   :  { %v1654_v58 = vadd.f32 %v2755_v43, %v1653_v57 }
0x260b   :  { %v2306_v59 = vpop.f32.mrf.mxu1 }
0x260c   :  { %1665 = vrot.lane.b32.xlu1 %v1654_v58, %s2443_s18  ;;  %v1657_v60 = vadd.f32 %v1654_v58, %v1048_v33  ;;  %v2034_v58 = vld [vmem:[%s2935_s8] ss:$0 sm:$0xff] }
0x260e   :  { %v2029_v61 = vmul.f32 -1.442695, %v1657_v60 }
0x2610   :  { %2423 = vpow2.f32 %v2029_v61 }
0x261d   :  { %v2424_v34 = vpop.eup %2423 }
0x261e   :  { %v1661_v62 = vadd.f32 1.0, %v2424_v34 }
0x2620   :  { %2425 = vrcp.f32 %v1661_v62 }
0x262d   :  { %v2426_v35 = vpop.eup %2425 }
0x267e   :  { %v1666_v63 = vpop.permute.xlu1 %1665 }
0x267f   :  { %v1668_v6 = vmul.f32 %v2426_v35, %v1666_v63 }
0x2681   :  { %1670 = vrot.lane.b32.xlu0 %v1668_v6, %s2443_s18 }
0x26f3   :  { %v1671_v36 = vpop.permute.xlu0 %1670 }
0x26f4   :  { %v1673_v7 = vadd.f32 %v1671_v36, %v1048_v33 }
0x26f6   :  { %2427 = vtanh.f32 %v1673_v7 }
0x2703   :  { %v2428_v8 = vpop.eup %2427 }
0x2704   :  { %v1675_v9 = vsub.f32 %v1581_v55, %v2428_v8 }
0x2706   :  { %1677 = vrot.lane.b32.xlu1 %v1675_v9, %s2444_s2 }
0x2778   :  { %v1678_v10 = vpop.permute.xlu1 %1677 }
0x2779   :  { %v1680_v2 = vmul.f32 %v2426_v35, %v1678_v10 }
0x277b   :  { %1682 = vrot.lane.b32.xlu0 %v1680_v2, %s2445_s21 }
0x27ed   :  { %v1683_v11 = vpop.permute.xlu0 %1682 }
0x27ee   :  { %v1685_v12 = vadd.f32 %v2428_v8, %v1683_v11 }
0x27f0   :  { %1687 = vrot.lane.b32.xlu1 %v1685_v12, %s2443_s18 }
0x2862   :  { %v1688_v5 = vpop.permute.xlu1 %1687 }
0x2863   :  { %2316 = vmatmul.mubr.msk.f32.vlgmr.msra.gmra.mxu0 %vm44_vm1, %v1688_v5 }
0x2864   :  { %2337 = vmatprep.mubr.msk.f32.mxu0 %vm2442_vm0, %v2441_v0  ;;  %2330 = vmatpush3.msra.mxu0 %v1897_v1 }
0x2865   :  { %2331 = vmatprep.subr.mxu0 %v2441_v0 }
0x2866   :  { %2332 = vmatpush3.msra.mxu0 %v1896_v51 }
0x2867   :  { %2333 = vmatprep.subr.mxu0 %v2441_v0 }
0x2868   :  { %2334 = vmatpush3.msra.mxu0 %v1895_v53 }
0x2869   :  { %2335 = vmatprep.subr.mxu0 %v2441_v0 }
0x286a   :  { %2336 = vmatpush3.msra.mxu0 %v1894_v4 }
0x2923   :  { %v1757_v13 = vpop.f32.mrf.mxu0 }
0x2924   :  { %v1758_v14 = vadd.f32 %v2755_v43, %v1757_v13 }
0x2925   :  { %v2317_v15 = vpop.f32.mrf.mxu0 }
0x2926   :  { %1769 = vrot.lane.b32.xlu0 %v1758_v14, %s2443_s18  ;;  %v1761_v17 = vadd.f32 %v1758_v14, %v1053_v16 }
0x2928   :  { %v2031_v18 = vmul.f32 -1.442695, %v1761_v17 }
0x292a   :  { %2429 = vpow2.f32 %v2031_v18 }
0x2937   :  { %v2430_v19 = vpop.eup %2429 }
0x2938   :  { %v1765_v20 = vadd.f32 1.0, %v2430_v19 }
0x293a   :  { %2431 = vrcp.f32 %v1765_v20 }
0x2947   :  { %v2432_v21 = vpop.eup %2431 }
0x2998   :  { %v1770_v22 = vpop.permute.xlu0 %1769 }
0x2999   :  { %v1772_v23 = vmul.f32 %v2432_v21, %v1770_v22 }
0x299b   :  { %1774 = vrot.lane.b32.xlu1 %v1772_v23, %s2443_s18 }
0x2a0d   :  { %v1775_v24 = vpop.permute.xlu1 %1774 }
0x2a0e   :  { %v1777_v25 = vadd.f32 %v1775_v24, %v1053_v16 }
0x2a10   :  { %2433 = vtanh.f32 %v1777_v25 }
0x2a1d   :  { %v2434_v26 = vpop.eup %2433 }
0x2a1e   :  { %v1779_v27 = vsub.f32 %v1685_v12, %v2434_v26 }
0x2a20   :  { %1781 = vrot.lane.b32.xlu0 %v1779_v27, %s2444_s2 }
0x2a92   :  { %v1782_v28 = vpop.permute.xlu0 %1781 }
0x2a93   :  { %v1784_v3 = vmul.f32 %v2432_v21, %v1782_v28 }
0x2a95   :  { %1786 = vrot.lane.b32.xlu1 %v1784_v3, %s2445_s21 }
0x2b07   :  { %v1787_v29 = vpop.permute.xlu1 %1786 }
0x2b08   :  { %v1789_v30 = vadd.f32 %v2434_v26, %v1787_v29 }
0x2b0a   :  { %1791 = vrot.lane.b32.xlu0 %v1789_v30, %s2443_s18 }
0x2b7c   :  { %v1792_v31 = vpop.permute.xlu0 %1791 }
0x2b7d   :  { %2327 = vmatmul.mubr.msk.f32.vlgmr.msra.gmra.mxu1 %vm44_vm1, %v1792_v31 }
0x2c3d   :  { %v1861_v32 = vpop.f32.mrf.mxu1 }
0x2c3e   :  { %v1862_v37 = vadd.f32 %v2755_v43, %v1861_v32 }
0x2c3f   :  { %v2328_v38 = vpop.f32.mrf.mxu1 }
0x2c40   :  { %1873 = vrot.lane.b32.xlu1 %v1862_v37, %s2443_s18  ;;  %v1865_v40 = vadd.f32 %v1862_v37, %v1058_v39 }
0x2c42   :  { %v2033_v41 = vmul.f32 -1.442695, %v1865_v40 }
0x2c44   :  { %2435 = vpow2.f32 %v2033_v41 }
0x2c51   :  { %v2436_v42 = vpop.eup %2435 }
0x2c52   :  { %v1869_v44 = vadd.f32 1.0, %v2436_v42 }
0x2c54   :  { %2437 = vrcp.f32 %v1869_v44 }
0x2c61   :  { %v2438_v45 = vpop.eup %2437 }
0x2cb2   :  { %v1874_v46 = vpop.permute.xlu1 %1873 }
0x2cb3   :  { %v1876_v47 = vmul.f32 %v2438_v45, %v1874_v46 }
0x2cb5   :  { %1878 = vrot.lane.b32.xlu0 %v1876_v47, %s2443_s18 }
0x2d27   :  { %v1879_v48 = vpop.permute.xlu0 %1878 }
0x2d28   :  { %v1881_v49 = vadd.f32 %v1879_v48, %v1058_v39 }
0x2d2a   :  { %2439 = vtanh.f32 %v1881_v49 }
0x2d37   :  { %v2440_v43 = vpop.eup %2439 }
0x2d38   :  { %v1883_v52 = vsub.f32 %v1789_v30, %v2440_v43 }
0x2d3a   :  { %1885 = vrot.lane.b32.xlu1 %v1883_v52, %s2444_s2 }
0x2dac   :  { %v1886_v50 = vpop.permute.xlu1 %1885 }
0x2dad   :  { %v1888_v54 = vmul.f32 %v2438_v45, %v1886_v50 }
0x2daf   :  { %1890 = vrot.lane.b32.xlu0 %v1888_v54, %s2445_s21 }
0x2e21   :  { %v1891_v55 = vpop.permute.xlu0 %1890 }
0x2e22   :  { %v1893_v56 = vadd.f32 %v2440_v43, %v1891_v55 }
0x2e24   :  { %1906 = vrot.lane.b32.xlu1 %v1893_v56, %s2443_s18 }
0x2e96   :  { %v1907_v57 = vpop.permute.xlu1 %1906 }
0x2e97   :  { %2338 = vmatmul.mubr.msk.f32.vlgmr.msra.gmra.mxu0 %vm44_vm1, %v1907_v57 }
0x2f57   :  { %v1976_v59 = vpop.f32.mrf.mxu0 }
0x2f58   :  { %v1977_v33 = vadd.f32 %v2034_v58, %v1976_v59 }
0x2f59   :  { %v2339_v0 = vpop.f32.mrf.mxu0 }
0x2f5a   :  { %1981 = vst.msk [vmem:[%s2936_s9] sm:$0xff] %vm1980_vm2, %v1977_v33 }

</bundles_post_ra>
